<compile_context>
chip_gen: v7x
topology: tpu7x:2x2x1
jax: 0.10.0
libtpu: 0.0.40
codegen_flags: <defaults>
</compile_context>

<pallas_src>
import jax
import jax.numpy as jnp
from jax.experimental import pallas as pl
from jax.experimental.pallas import tpu as pltpu


# ----------------------------------------------------------------------- helpers
def _hswish(x):
    # PyTorch nn.Hardswish: x * relu6(x + 3) / 6
    return x * jnp.clip(x + 3.0, 0.0, 6.0) * (1.0 / 6.0)


def _bn_affine(bn, eps=1e-5):
    # Inference-mode BatchNorm folded to a per-channel affine (scale, shift).
    gamma, beta, mean, var = bn
    s = gamma / jnp.sqrt(var + eps)
    return s, beta - mean * s


def _round_up(x, m):
    return ((x + m - 1) // m) * m


def _chip_tuning():
    """(max time-rows per block, scoped-VMEM cap) per TPU generation."""
    kind = ""
    try:
        kind = jax.devices()[0].device_kind.lower()
    except Exception:
        pass
    if "v7" in kind:                       # 64 MiB physical VMEM: keep blocks/cap modest
        return 48, 48 * 1024 * 1024
    if "v5" in kind or "v6" in kind:       # 128 MiB physical VMEM: bigger row blocks
        return 128, 80 * 1024 * 1024
    return 64, 32 * 1024 * 1024            # unknown chip: conservative defaults


def _pick_time_block(T, bt_max):
    """Time rows per block.  Multiple of 16 so the in-kernel (V,BT,X) <-> (V*BT,X)
    collapses of bf16/f32 values stay (16,128)-tile aligned (free shape casts)."""
    t16 = _round_up(T, 16)
    if t16 <= bt_max:
        return t16, t16
    for bt in range(bt_max, 15, -16):
        tp = _round_up(T, bt)
        if tp - T <= max(T // 8, 16):      # keep time padding under ~12.5 %
            return bt, tp
    return 16, t16


# ----------------------------------------------------------------------- Pallas kernels
def _gcn_matmul_kernel(x_ref, g_ref, w_ref, y_ref):
    # Shift_gcn hot path: (x_shifted * (tanh(view_gate)+1)) @ W.  Bias folded downstream.
    # x_ref: (V, BT, C) bf16;  g_ref: (V, 1, C) f32;  w_ref: (C, OC) bf16.
    v, bt, c = x_ref.shape
    oc = w_ref.shape[1]
    xg = x_ref[...].astype(jnp.float32) * g_ref[...]          # f32 on the VPU (v5e-safe)
    xg = xg.reshape(v * bt, c).astype(w_ref.dtype)            # tile-aligned collapse
    y = jnp.dot(xg, w_ref[...], preferred_element_type=jnp.float32)
    y_ref[...] = y.reshape(v, bt, oc).astype(y_ref.dtype)


def _post_tcn_kernel(ysh_ref, x0_ref, s1_ref, b1_ref, tg_ref,
                     wdr_ref, wt_ref, vec_ref, o_ref):
    # Fused tail: BN1d affine + {down | residual} fused 1x1 conv + ReLU     (Shift_gcn)
    #          -> folded BN*time-gate -> temporal 1x1 conv -> ReLU -> BN2   (Shift_tcn)
    #          -> + residual branch -> final ReLU                           (TCN_GCN_unit)
    v, bt, c = x0_ref.shape
    oc = ysh_ref.shape[-1]
    f32 = jnp.float32

    x0 = x0_ref[...].reshape(v * bt, c)                       # x0 streamed exactly once
    dr = jnp.dot(x0, wdr_ref[...], preferred_element_type=f32).reshape(v, bt, 2 * oc)
    d = dr[:, :, :oc]                                         # down branch
    r = dr[:, :, oc:]                                         # residual branch

    z = ysh_ref[...].astype(f32) * s1_ref[...] + b1_ref[...]  # BN1d (+ folded biases)
    x1 = jnp.maximum(z + d, 0.0)

    tg = tg_ref[...]                                          # (1, BT, 2*OC) f32
    a = (x1 * tg[:, :, :oc]).reshape(v * bt, oc)              # BN*gate scale; gate shift
    m = jnp.dot(a.astype(wt_ref.dtype), wt_ref[...],          #  folded into per-t bias
                preferred_element_type=f32).reshape(v, bt, oc) + tg[:, :, oc:]
    vec = vec_ref[...]                                        # (2,1,OC): [bn2 s; t2+res b]
    b = jnp.maximum(m, 0.0) * vec[0:1] + vec[1:2]
    o_ref[...] = jnp.maximum(b + r, 0.0).astype(o_ref.dtype)


# ----------------------------------------------------------------------- YczAtt gates
def _attention_gates(x_sh, params):
    # YczAtt on the shift_in-permuted input.  Tiny tensors -> plain jnp (XLA fuses).
    # x_sh: (N, V, T, C).  The batch mean is taken right after the SumConv hardswish;
    # the (affine) TimeConv2/ViewConv2 commute with the mean, and sigmoid/tanh are
    # applied after the mean exactly as in the reference.
    N, V, T, C = x_sh.shape
    sv, tv = _bn_affine(params["view_bn"])
    st, tt = _bn_affine(params["time_bn"])
    yv = jnp.einsum("nvtc,v->nct", x_sh, params["view_w"]) + params["view_b"]
    yt = jnp.einsum("nvtc,t->ncv", x_sh, params["time_w"]) + params["time_b"]
    yv = _hswish(yv * sv + tv)                                # (N, C, T)
    yt = _hswish(yt * st + tt)                                # (N, C, V)

    # torch: cat([x_time, x_view], dim=2).view(-1, C, T + 25) -- replicated verbatim
    # (flat concat + row-major view; intentionally reproduces the reference layout).
    xs = jnp.concatenate([yt.reshape(N, C * V), yv.reshape(N, C * T)], axis=1)
    xs = xs.reshape(N, C, T + V)

    ss, ts = _bn_affine(params["sum_bn"])
    w_sum = params["sum_w"] * ss[:, None]                     # (OC, C), BN folded
    b_sum = params["sum_b"] * ss + ts
    h = jnp.einsum("ncs,oc->nos", xs, w_sum) + b_sum[None, :, None]
    hm = jnp.mean(_hswish(h), axis=0)                         # (OC, T+V)

    gt = jax.nn.sigmoid(params["time2_w"] @ hm[:, :T] + params["time2_b"][:, None])
    gv = jax.nn.sigmoid(params["view2_w"] @ hm[:, T:] + params["view2_b"][:, None])
    att_time = jnp.tanh(gt).T + 1.0                           # (T, OC)
    att_view = jnp.tanh(gv).T + 1.0                           # (V, C)
    return att_time, att_view


# ----------------------------------------------------------------------- forward
def tcn_gcn_unit_forward(x0, params, out_dtype=jnp.float32):
    """TCN_GCN_unit forward.  x0: (N, C, T, V) float32 -> (N, OC, T, V) out_dtype."""
    f32, bf16 = jnp.float32, jnp.bfloat16
    N, C, T, V = x0.shape
    OC = params["lin_w"].shape[1]

    bt_max, vmem_limit = _chip_tuning()
    BT, Tp = _pick_time_block(T, bt_max)
    num_tb = Tp // BT
    grid = (num_tb, N)                     # both axes parallel; on v7x one axis >= 2 is
                                           # sharded across the two TensorCores
    cparams = pltpu.CompilerParams(
        dimension_semantics=("parallel", "parallel"),
        vmem_limit_bytes=vmem_limit)

    blk_c = pl.BlockSpec((None, V, BT, C), lambda tb, n: (n, 0, tb, 0))
    blk_o = pl.BlockSpec((None, V, BT, OC), lambda tb, n: (n, 0, tb, 0))
    blk_tg = pl.BlockSpec((1, BT, 2 * OC), lambda tb, n: (0, tb, 0))
    inv = lambda shape: pl.BlockSpec(shape, lambda tb, n: (0,) * len(shape))

    # ---- joint-major channel-last layout + spatial shift_in ---------------------------
    # TODO(synk): shift_in / shift_out are per-channel circular rolls along the 25-joint
    # axis; they stay as XLA take_along_axis because Mosaic's strided rotate on a
    # 25-long, non-tile-aligned axis is not a robust lowering, which is also why the GCN
    # matmul and the fused tail remain two pallas_calls with the roll between them.
    x_nvtc = jnp.transpose(x0, (0, 3, 2, 1))                  # (N, V, T, C)
    vin = (jnp.arange(V)[:, None] + jnp.arange(C)[None, :]) % V
    x_sh = jnp.take_along_axis(x_nvtc, vin[None, :, None, :], axis=1)

    # ---- YczAtt attention gates (tiny, plain jnp) --------------------------------------
    att_time, att_view = _attention_gates(x_sh, params)       # (T, OC), (V, C)

    # ---- pad time so blocks stay (16,128)-tile aligned ---------------------------------
    if Tp != T:
        tpad = ((0, 0), (0, 0), (0, Tp - T), (0, 0))
        x_sh = jnp.pad(x_sh, tpad)
        x_nvtc = jnp.pad(x_nvtc, tpad)
        att_time = jnp.pad(att_time, ((0, Tp - T), (0, 0)))

    # ---- Shift_gcn matmul: (x_sh * view_gate) @ W --------------------------------------
    y = pl.pallas_call(
        _gcn_matmul_kernel,
        grid=grid,
        in_specs=[blk_c, inv((V, 1, C)), inv((C, OC))],
        out_specs=blk_o,
        out_shape=jax.ShapeDtypeStruct((N, V, Tp, OC), bf16),
        compiler_params=cparams,
    )(x_sh.astype(bf16), att_view.reshape(V, 1, C).astype(f32),
      params["lin_w"].astype(bf16))

    # ---- spatial shift_out (XLA gather, see TODO above) --------------------------------
    vout = (jnp.arange(V)[:, None] - jnp.arange(OC)[None, :]) % V
    y_sh = jnp.take_along_axis(y, vout[None, :, None, :], axis=1)

    # ---- fold every BatchNorm / bias / gate into compact tiles -------------------------
    s1, b1 = _bn_affine(params["bn1d"])                       # BN1d(25*OC), per (v, oc)
    s1 = s1.reshape(V, OC)
    b1 = b1.reshape(V, OC)
    sd, td = _bn_affine(params["down_bn"])
    w_down = params["down_w"].T * sd[None, :]                 # (C, OC), BN folded
    b_down = params["down_b"] * sd + td
    sr, tr = _bn_affine(params["res_bn"])
    w_res = params["res_w"].T * sr[None, :]                   # (C, OC), BN folded
    b_res = params["res_b"] * sr + tr
    # GCN bias + down bias folded into the BN1d shift (all land before the first ReLU).
    b1f = b1 + params["lin_b"][None, :] * s1 + b_down[None, :]           # (V, OC)

    sb, tb_aff = _bn_affine(params["tcn_bn"])                 # Shift_tcn BN before gate
    w_temp = params["temp_w"].T                               # (OC_in, OC_out)
    tgs = att_time * sb[None, :]                              # (Tp, OC) gate * BN scale
    # gate * BN shift pushed through the (linear) temporal conv into a per-t bias.
    bt_t = (att_time * tb_aff[None, :]) @ w_temp + params["temp_b"][None, :]
    s2, t2 = _bn_affine(params["tcn_bn2"])
    c2 = t2 + b_res                                           # BN2 shift + residual bias

    wdr = jnp.concatenate([w_down, w_res], axis=1).astype(bf16)          # (C, 2*OC)
    tg = jnp.concatenate([tgs, bt_t], axis=1)[None].astype(f32)          # (1, Tp, 2*OC)
    vec = jnp.stack([s2, c2], axis=0).reshape(2, 1, OC).astype(f32)

    # ---- fused tail: one kernel, x0 streamed exactly once -------------------------------
    # TODO(synk): the external cuda `Shift` temporal-shift op of Shift_tcn is identity.
    out = pl.pallas_call(
        _post_tcn_kernel,
        grid=grid,
        in_specs=[blk_o, blk_c, inv((V, 1, OC)), inv((V, 1, OC)), blk_tg,
                  inv((C, 2 * OC)), inv((OC, OC)), inv((2, 1, OC))],
        out_specs=blk_o,
        out_shape=jax.ShapeDtypeStruct((N, V, Tp, OC), out_dtype),
        compiler_params=cparams,
    )(y_sh, x_nvtc.astype(bf16),
      s1.reshape(V, 1, OC).astype(f32), b1f.reshape(V, 1, OC).astype(f32),
      tg, wdr, w_temp.astype(bf16), vec)

    # Drop time padding and return NCHW (kept only for interface parity; stacked units
    # would carry the channel-last (N, V, T, C) layout end-to-end).
    out = out[:, :, :T, :]
    return jnp.transpose(out, (0, 3, 2, 1))                   # (N, OC, T, V)


# ----------------------------------------------------------------------- params
def init_params(key, C, OC, T, V=25):
    ks = jax.random.split(key, 16)
    f32 = jnp.float32

    def nrm(k, shape, std):
        return std * jax.random.normal(k, shape, dtype=f32)

    def bn(n):          # (gamma, beta, running_mean, running_var) — fresh PyTorch init
        return (jnp.ones((n,), f32), jnp.zeros((n,), f32),
                jnp.zeros((n,), f32), jnp.ones((n,), f32))

    def bn_scalar():
        return (jnp.asarray(1.0, f32), jnp.asarray(0.0, f32),
                jnp.asarray(0.0, f32), jnp.asarray(1.0, f32))

    return {
        # --- Shift_gcn ---
        "lin_w": nrm(ks[0], (C, OC), (1.0 / OC) ** 0.5),
        "lin_b": jnp.zeros((OC,), f32),
        "down_w": nrm(ks[1], (OC, C), (2.0 / OC) ** 0.5),
        "down_b": jnp.zeros((OC,), f32),
        "down_bn": bn(OC),
        "bn1d": bn(V * OC),
        # --- YczAtt ---
        "view_w": nrm(ks[2], (V,), 2.0 ** 0.5),
        "view_b": nrm(ks[3], (), 0.1),
        "view_bn": bn_scalar(),
        "time_w": nrm(ks[4], (T,), 2.0 ** 0.5),
        "time_b": nrm(ks[5], (), 0.1),
        "time_bn": bn_scalar(),
        "sum_w": nrm(ks[6], (OC, C), (2.0 / OC) ** 0.5),
        "sum_b": nrm(ks[7], (OC,), 0.1),
        "sum_bn": bn(OC),
        "time2_w": nrm(ks[8], (OC, OC), (2.0 / OC) ** 0.5),
        "time2_b": nrm(ks[9], (OC,), 0.1),
        "view2_w": nrm(ks[10], (C, OC), (2.0 / C) ** 0.5),
        "view2_b": nrm(ks[11], (C,), 0.1),
        # --- Shift_tcn ---
        "tcn_bn": bn(OC),
        "tcn_bn2": bn(OC),
        "temp_w": nrm(ks[12], (OC, OC), (2.0 / OC) ** 0.5),
        "temp_b": nrm(ks[13], (OC,), 0.1),
        # --- residual tcn (kernel_size=1, stride=1) ---
        # TODO(synk): the reference uses identity down/residual when C == OC; the C != OC
        # conv branches below match the toy configuration exercised here.
        "res_w": nrm(ks[14], (OC, C), (2.0 / OC) ** 0.5),
        "res_b": jnp.zeros((OC,), f32),
        "res_bn": bn(OC),
    }


if __name__ == "__main__":
    N, C_IN, C_OUT, T, V = 2, 4, 8, 8, 25      # in_time = T = 8, V = 25 joints (fixed)
    key = jax.random.PRNGKey(0)
    kx, kp = jax.random.split(key)
    x = jax.random.normal(kx, (N, C_IN, T, V), dtype=jnp.float32)
    params = init_params(kp, C_IN, C_OUT, T, V)

    fwd = jax.jit(tcn_gcn_unit_forward)
    out = jax.block_until_ready(fwd(x, params))
    assert out.shape == (N, C_OUT, T, V), out.shape
    assert bool(jnp.all(jnp.isfinite(out)))
    print("KERNEL_OK")
</pallas_src>

<mosaic_0001>
module attributes {stable_mosaic.version = 11 : i64} {
  func.func @_gcn_matmul_kernel(%arg0: i32, %arg1: i32, %arg2: memref<1x25x16x4xbf16, #tpu.memory_space<vmem>>, %arg3: memref<25x1x4xf32, #tpu.memory_space<vmem>>, %arg4: memref<4x8xbf16, #tpu.memory_space<vmem>>, %arg5: memref<1x25x16x8xbf16, #tpu.memory_space<vmem>>) attributes {dimension_semantics = [#tpu.dimension_semantics<parallel>, #tpu.dimension_semantics<parallel>], iteration_bounds = array<i64: 1, 2>, scalar_prefetch = 0 : i64, scratch_operands = 0 : i64, tpu.core_type = #tpu.core_type<tc>, window_params = [{transform_indices = @transform_0, window_bounds = array<i64: 1, 25, 16, 4>}, {pipeline_mode = #tpu.pipeline_mode<synchronous>, transform_indices = @transform_1, window_bounds = array<i64: 25, 1, 4>}, {pipeline_mode = #tpu.pipeline_mode<synchronous>, transform_indices = @transform_2, window_bounds = array<i64: 4, 8>}, {transform_indices = @transform_3, window_bounds = array<i64: 1, 25, 16, 8>}]} {
    %c0 = arith.constant 0 : index
    %c0_0 = arith.constant 0 : index
    %c0_1 = arith.constant 0 : index
    %c0_2 = arith.constant 0 : index
    %0 = vector.load %arg2[%c0, %c0_0, %c0_1, %c0_2] : memref<1x25x16x4xbf16, #tpu.memory_space<vmem>>, vector<1x25x16x4xbf16>
    %1 = vector.shape_cast %0 : vector<1x25x16x4xbf16> to vector<25x16x4xbf16>
    %2 = arith.extf %1 : vector<25x16x4xbf16> to vector<25x16x4xf32>
    %c0_3 = arith.constant 0 : index
    %c0_4 = arith.constant 0 : index
    %c0_5 = arith.constant 0 : index
    %3 = vector.load %arg3[%c0_3, %c0_4, %c0_5] : memref<25x1x4xf32, #tpu.memory_space<vmem>>, vector<25x1x4xf32>
    %4 = vector.broadcast %3 : vector<25x1x4xf32> to vector<25x16x4xf32>
    %5 = arith.mulf %2, %4 : vector<25x16x4xf32>
    %6 = vector.shape_cast %5 : vector<25x16x4xf32> to vector<400x4xf32>
    %7 = arith.truncf %6 : vector<400x4xf32> to vector<400x4xbf16>
    %c0_6 = arith.constant 0 : index
    %c0_7 = arith.constant 0 : index
    %8 = vector.load %arg4[%c0_6, %c0_7] : memref<4x8xbf16, #tpu.memory_space<vmem>>, vector<4x8xbf16>
    %cst = arith.constant dense<0.000000e+00> : vector<400x8xf32>
    %9 = tpu.matmul %7, %8, %cst {dimension_numbers = #tpu.dot_dimension_numbers<[1], [0], [0], [1], [0, 0, 1, 1], [], []>} : vector<400x4xbf16>, vector<4x8xbf16>, vector<400x8xf32> -> vector<400x8xf32>
    %10 = vector.shape_cast %9 : vector<400x8xf32> to vector<25x16x8xf32>
    %11 = arith.truncf %10 : vector<25x16x8xf32> to vector<25x16x8xbf16>
    %c0_8 = arith.constant 0 : index
    %c0_9 = arith.constant 0 : index
    %c0_10 = arith.constant 0 : index
    %c0_11 = arith.constant 0 : index
    %12 = vector.load %arg5[%c0_8, %c0_9, %c0_10, %c0_11] : memref<1x25x16x8xbf16, #tpu.memory_space<vmem>>, vector<1x25x16x8xbf16>
    %13 = vector.shape_cast %12 : vector<1x25x16x8xbf16> to vector<25x16x8xbf16>
    %14 = vector.shape_cast %11 : vector<25x16x8xbf16> to vector<1x25x16x8xbf16>
    tpu.vector_store %arg5[%c0_8, %c0_9, %c0_10, %c0_11], %14 {strides = array<i32>} : memref<1x25x16x8xbf16, #tpu.memory_space<vmem>>, vector<1x25x16x8xbf16>,
    return
  }
  func.func @transform_0(%arg0: i32, %arg1: i32) -> (i32, i32, i32, i32) {
    %c0_i32 = arith.constant 0 : i32
    %c0_i32_0 = arith.constant 0 : i32
    %c0_i32_1 = arith.constant 0 : i32
    return %arg1, %c0_i32, %arg0, %c0_i32_0 : i32, i32, i32, i32
  }
  func.func @transform_1(%arg0: i32, %arg1: i32) -> (i32, i32, i32) {
    %c0_i32 = arith.constant 0 : i32
    %c0_i32_0 = arith.constant 0 : i32
    %c0_i32_1 = arith.constant 0 : i32
    %c0_i32_2 = arith.constant 0 : i32
    return %c0_i32, %c0_i32_0, %c0_i32_1 : i32, i32, i32
  }
  func.func @transform_2(%arg0: i32, %arg1: i32) -> (i32, i32) {
    %c0_i32 = arith.constant 0 : i32
    %c0_i32_0 = arith.constant 0 : i32
    %c0_i32_1 = arith.constant 0 : i32
    return %c0_i32, %c0_i32_0 : i32, i32
  }
  func.func @transform_3(%arg0: i32, %arg1: i32) -> (i32, i32, i32, i32) {
    %c0_i32 = arith.constant 0 : i32
    %c0_i32_0 = arith.constant 0 : i32
    %c0_i32_1 = arith.constant 0 : i32
    return %arg1, %c0_i32, %arg0, %c0_i32_0 : i32, i32, i32, i32
  }
}

module attributes {stable_mosaic.version = 11 : i64} {
  func.func @_post_tcn_kernel(%arg0: i32, %arg1: i32, %arg2: memref<1x25x16x8xbf16, #tpu.memory_space<vmem>>, %arg3: memref<1x25x16x4xbf16, #tpu.memory_space<vmem>>, %arg4: memref<25x1x8xf32, #tpu.memory_space<vmem>>, %arg5: memref<25x1x8xf32, #tpu.memory_space<vmem>>, %arg6: memref<1x16x16xf32, #tpu.memory_space<vmem>>, %arg7: memref<4x16xbf16, #tpu.memory_space<vmem>>, %arg8: memref<8x8xbf16, #tpu.memory_space<vmem>>, %arg9: memref<2x1x8xf32, #tpu.memory_space<vmem>>, %arg10: memref<1x25x16x8xf32, #tpu.memory_space<vmem>>) attributes {dimension_semantics = [#tpu.dimension_semantics<parallel>, #tpu.dimension_semantics<parallel>], iteration_bounds = array<i64: 1, 2>, scalar_prefetch = 0 : i64, scratch_operands = 0 : i64, tpu.core_type = #tpu.core_type<tc>, window_params = [{transform_indices = @transform_0, window_bounds = array<i64: 1, 25, 16, 8>}, {transform_indices = @transform_1, window_bounds = array<i64: 1, 25, 16, 4>}, {pipeline_mode = #tpu.pipeline_mode<synchronous>, transform_indices = @transform_2, window_bounds = array<i64: 25, 1, 8>}, {pipeline_mode = #tpu.pipeline_mode<synchronous>, transform_indices = @transform_3, window_bounds = array<i64: 25, 1, 8>}, {transform_indices = @transform_4, window_bounds = array<i64: 1, 16, 16>}, {pipeline_mode = #tpu.pipeline_mode<synchronous>, transform_indices = @transform_5, window_bounds = array<i64: 4, 16>}, {pipeline_mode = #tpu.pipeline_mode<synchronous>, transform_indices = @transform_6, window_bounds = array<i64: 8, 8>}, {pipeline_mode = #tpu.pipeline_mode<synchronous>, transform_indices = @transform_7, window_bounds = array<i64: 2, 1, 8>}, {transform_indices = @transform_8, window_bounds = array<i64: 1, 25, 16, 8>}]} {
    %c0 = arith.constant 0 : index
    %c0_0 = arith.constant 0 : index
    %c0_1 = arith.constant 0 : index
    %c0_2 = arith.constant 0 : index
    %0 = vector.load %arg3[%c0, %c0_0, %c0_1, %c0_2] : memref<1x25x16x4xbf16, #tpu.memory_space<vmem>>, vector<1x25x16x4xbf16>
    %1 = vector.shape_cast %0 : vector<1x25x16x4xbf16> to vector<25x16x4xbf16>
    %2 = vector.shape_cast %1 : vector<25x16x4xbf16> to vector<400x4xbf16>
    %c0_3 = arith.constant 0 : index
    %c0_4 = arith.constant 0 : index
    %3 = vector.load %arg7[%c0_3, %c0_4] : memref<4x16xbf16, #tpu.memory_space<vmem>>, vector<4x16xbf16>
    %cst = arith.constant dense<0.000000e+00> : vector<400x16xf32>
    %4 = tpu.matmul %2, %3, %cst {dimension_numbers = #tpu.dot_dimension_numbers<[1], [0], [0], [1], [0, 0, 1, 1], [], []>} : vector<400x4xbf16>, vector<4x16xbf16>, vector<400x16xf32> -> vector<400x16xf32>
    %5 = vector.shape_cast %4 : vector<400x16xf32> to vector<25x16x16xf32>
    %6 = vector.extract_strided_slice %5 {offsets = [0, 0, 0], sizes = [25, 16, 8], strides = [1, 1, 1]} : vector<25x16x16xf32> to vector<25x16x8xf32>
    %7 = vector.extract_strided_slice %5 {offsets = [0, 0, 8], sizes = [25, 16, 8], strides = [1, 1, 1]} : vector<25x16x16xf32> to vector<25x16x8xf32>
    %c0_5 = arith.constant 0 : index
    %c0_6 = arith.constant 0 : index
    %c0_7 = arith.constant 0 : index
    %c0_8 = arith.constant 0 : index
    %8 = vector.load %arg2[%c0_5, %c0_6, %c0_7, %c0_8] : memref<1x25x16x8xbf16, #tpu.memory_space<vmem>>, vector<1x25x16x8xbf16>
    %9 = vector.shape_cast %8 : vector<1x25x16x8xbf16> to vector<25x16x8xbf16>
    %10 = arith.extf %9 : vector<25x16x8xbf16> to vector<25x16x8xf32>
    %c0_9 = arith.constant 0 : index
    %c0_10 = arith.constant 0 : index
    %c0_11 = arith.constant 0 : index
    %11 = vector.load %arg4[%c0_9, %c0_10, %c0_11] : memref<25x1x8xf32, #tpu.memory_space<vmem>>, vector<25x1x8xf32>
    %12 = vector.broadcast %11 : vector<25x1x8xf32> to vector<25x16x8xf32>
    %13 = arith.mulf %10, %12 : vector<25x16x8xf32>
    %c0_12 = arith.constant 0 : index
    %c0_13 = arith.constant 0 : index
    %c0_14 = arith.constant 0 : index
    %14 = vector.load %arg5[%c0_12, %c0_13, %c0_14] : memref<25x1x8xf32, #tpu.memory_space<vmem>>, vector<25x1x8xf32>
    %15 = vector.broadcast %14 : vector<25x1x8xf32> to vector<25x16x8xf32>
    %16 = arith.addf %13, %15 : vector<25x16x8xf32>
    %17 = arith.addf %16, %6 : vector<25x16x8xf32>
    %cst_15 = arith.constant 0.000000e+00 : f32
    %18 = vector.broadcast %cst_15 : f32 to vector<25x16x8xf32>
    %19 = arith.maximumf %17, %18 : vector<25x16x8xf32>
    %c0_16 = arith.constant 0 : index
    %c0_17 = arith.constant 0 : index
    %c0_18 = arith.constant 0 : index
    %20 = vector.load %arg6[%c0_16, %c0_17, %c0_18] : memref<1x16x16xf32, #tpu.memory_space<vmem>>, vector<1x16x16xf32>
    %21 = vector.extract_strided_slice %20 {offsets = [0, 0, 0], sizes = [1, 16, 8], strides = [1, 1, 1]} : vector<1x16x16xf32> to vector<1x16x8xf32>
    %22 = vector.broadcast %21 : vector<1x16x8xf32> to vector<25x16x8xf32>
    %23 = arith.mulf %19, %22 : vector<25x16x8xf32>
    %24 = vector.shape_cast %23 : vector<25x16x8xf32> to vector<400x8xf32>
    %25 = arith.truncf %24 : vector<400x8xf32> to vector<400x8xbf16>
    %c0_19 = arith.constant 0 : index
    %c0_20 = arith.constant 0 : index
    %26 = vector.load %arg8[%c0_19, %c0_20] : memref<8x8xbf16, #tpu.memory_space<vmem>>, vector<8x8xbf16>
    %cst_21 = arith.constant dense<0.000000e+00> : vector<400x8xf32>
    %27 = tpu.matmul %25, %26, %cst_21 {dimension_numbers = #tpu.dot_dimension_numbers<[1], [0], [0], [1], [0, 0, 1, 1], [], []>} : vector<400x8xbf16>, vector<8x8xbf16>, vector<400x8xf32> -> vector<400x8xf32>
    %28 = vector.shape_cast %27 : vector<400x8xf32> to vector<25x16x8xf32>
    %29 = vector.extract_strided_slice %20 {offsets = [0, 0, 8], sizes = [1, 16, 8], strides = [1, 1, 1]} : vector<1x16x16xf32> to vector<1x16x8xf32>
    %30 = vector.broadcast %29 : vector<1x16x8xf32> to vector<25x16x8xf32>
    %31 = arith.addf %28, %30 : vector<25x16x8xf32>
    %c0_22 = arith.constant 0 : index
    %c0_23 = arith.constant 0 : index
    %c0_24 = arith.constant 0 : index
    %32 = vector.load %arg9[%c0_22, %c0_23, %c0_24] : memref<2x1x8xf32, #tpu.memory_space<vmem>>, vector<2x1x8xf32>
    %cst_25 = arith.constant 0.000000e+00 : f32
    %33 = vector.broadcast %cst_25 : f32 to vector<25x16x8xf32>
    %34 = arith.maximumf %31, %33 : vector<25x16x8xf32>
    %35 = vector.extract_strided_slice %32 {offsets = [0, 0, 0], sizes = [1, 1, 8], strides = [1, 1, 1]} : vector<2x1x8xf32> to vector<1x1x8xf32>
    %36 = vector.broadcast %35 : vector<1x1x8xf32> to vector<25x16x8xf32>
    %37 = arith.mulf %34, %36 : vector<25x16x8xf32>
    %38 = vector.extract_strided_slice %32 {offsets = [1, 0, 0], sizes = [1, 1, 8], strides = [1, 1, 1]} : vector<2x1x8xf32> to vector<1x1x8xf32>
    %39 = vector.broadcast %38 : vector<1x1x8xf32> to vector<25x16x8xf32>
    %40 = arith.addf %37, %39 : vector<25x16x8xf32>
    %41 = arith.addf %40, %7 : vector<25x16x8xf32>
    %cst_26 = arith.constant 0.000000e+00 : f32
    %42 = vector.broadcast %cst_26 : f32 to vector<25x16x8xf32>
    %43 = arith.maximumf %41, %42 : vector<25x16x8xf32>
    %c0_27 = arith.constant 0 : index
    %c0_28 = arith.constant 0 : index
    %c0_29 = arith.constant 0 : index
    %c0_30 = arith.constant 0 : index
    %44 = vector.load %arg10[%c0_27, %c0_28, %c0_29, %c0_30] : memref<1x25x16x8xf32, #tpu.memory_space<vmem>>, vector<1x25x16x8xf32>
    %45 = vector.shape_cast %44 : vector<1x25x16x8xf32> to vector<25x16x8xf32>
    %46 = vector.shape_cast %43 : vector<25x16x8xf32> to vector<1x25x16x8xf32>
    tpu.vector_store %arg10[%c0_27, %c0_28, %c0_29, %c0_30], %46 {strides = array<i32>} : memref<1x25x16x8xf32, #tpu.memory_space<vmem>>, vector<1x25x16x8xf32>,
    return
  }
  func.func @transform_0(%arg0: i32, %arg1: i32) -> (i32, i32, i32, i32) {
    %c0_i32 = arith.constant 0 : i32
    %c0_i32_0 = arith.constant 0 : i32
    %c0_i32_1 = arith.constant 0 : i32
    return %arg1, %c0_i32, %arg0, %c0_i32_0 : i32, i32, i32, i32
  }
  func.func @transform_1(%arg0: i32, %arg1: i32) -> (i32, i32, i32, i32) {
    %c0_i32 = arith.constant 0 : i32
    %c0_i32_0 = arith.constant 0 : i32
    %c0_i32_1 = arith.constant 0 : i32
    return %arg1, %c0_i32, %arg0, %c0_i32_0 : i32, i32, i32, i32
  }
  func.func @transform_2(%arg0: i32, %arg1: i32) -> (i32, i32, i32) {
    %c0_i32 = arith.constant 0 : i32
    %c0_i32_0 = arith.constant 0 : i32
    %c0_i32_1 = arith.constant 0 : i32
    %c0_i32_2 = arith.constant 0 : i32
    return %c0_i32, %c0_i32_0, %c0_i32_1 : i32, i32, i32
  }
  func.func @transform_3(%arg0: i32, %arg1: i32) -> (i32, i32, i32) {
    %c0_i32 = arith.constant 0 : i32
    %c0_i32_0 = arith.constant 0 : i32
    %c0_i32_1 = arith.constant 0 : i32
    %c0_i32_2 = arith.constant 0 : i32
    return %c0_i32, %c0_i32_0, %c0_i32_1 : i32, i32, i32
  }
  func.func @transform_4(%arg0: i32, %arg1: i32) -> (i32, i32, i32) {
    %c0_i32 = arith.constant 0 : i32
    %c0_i32_0 = arith.constant 0 : i32
    %c0_i32_1 = arith.constant 0 : i32
    return %c0_i32, %arg0, %c0_i32_0 : i32, i32, i32
  }
  func.func @transform_5(%arg0: i32, %arg1: i32) -> (i32, i32) {
    %c0_i32 = arith.constant 0 : i32
    %c0_i32_0 = arith.constant 0 : i32
    %c0_i32_1 = arith.constant 0 : i32
    return %c0_i32, %c0_i32_0 : i32, i32
  }
  func.func @transform_6(%arg0: i32, %arg1: i32) -> (i32, i32) {
    %c0_i32 = arith.constant 0 : i32
    %c0_i32_0 = arith.constant 0 : i32
    %c0_i32_1 = arith.constant 0 : i32
    return %c0_i32, %c0_i32_0 : i32, i32
  }
  func.func @transform_7(%arg0: i32, %arg1: i32) -> (i32, i32, i32) {
    %c0_i32 = arith.constant 0 : i32
    %c0_i32_0 = arith.constant 0 : i32
    %c0_i32_1 = arith.constant 0 : i32
    %c0_i32_2 = arith.constant 0 : i32
    return %c0_i32, %c0_i32_0, %c0_i32_1 : i32, i32, i32
  }
  func.func @transform_8(%arg0: i32, %arg1: i32) -> (i32, i32, i32, i32) {
    %c0_i32 = arith.constant 0 : i32
    %c0_i32_0 = arith.constant 0 : i32
    %c0_i32_1 = arith.constant 0 : i32
    return %arg1, %c0_i32, %arg0, %c0_i32_0 : i32, i32, i32, i32
  }
}

</mosaic_0001>

<bundles_post_ra>
// kernel: tcn_gcn_unit_forward.2
= control target key start
LH: loop header
LB: loop body
LE: loop exit
PB: predicated region body
PF: predicated region fallthrough
CT: control target
= control target key end

     0   :  { %s1699_s12 = smov 0   ;;  %s1701_s13 = smov 0   ;;  %s2023_s0 = inlined_call_operand.vmem [shape: bf16[2,25,16,4], index: 0, kind: input, shape index: {}]   ;;  %s2024_s1 = inlined_call_operand.vmem [shape: f32[25,1,4], index: 1, kind: input, shape index: {}]   ;;  %s2025_s2 = inlined_call_operand.vmem [shape: bf16[4,8], index: 2, kind: input, shape index: {}]   ;;  %s2026_s3 = inlined_call_operand.vmem [shape: bf16[2,25,16,8], index: 3, kind: output, shape index: {}]  }
   0x1   :  { %s1703_s14 = smov 0  }
   0x2 LB: > { %s22_s15 = sadd.s32 1, %s1671_s13  ;;  %p1217_p0 = scmp.ge.s32.totalorder %s1675_s14, 1  ;;  %s1675_s14 = sphi %s1703_s14, %s13_s14   ;;  %s1671_s13 = sphi %s1701_s13, %s2028_s13   ;;  %s1667_s12 = sphi %s1699_s12, %s2027_s12  }
   0x3   : > { %p23_p1 = scmp.ge.s32.totalorder %s22_s15, 2  ;;  %p158_p2 = scmp.lt.s32.totalorder %s1675_s14, 3 }
   0x5   : > { %s2030_s15 = smov (%p23_p1, %s22_s15), 0  ;;  %p159_p3 = pnand %p1217_p0, %p158_p2 }
   0x6   : > { %v561_v0 = vld [vmem:[%s2025_s2] sm:$0x3] (!%p159_p3)  ;;  %vm638_vm0 = vcmask (!%p159_p3), 1041408   ;;  %p191_p4 = scmp.lt.s32.totalorder (!%p159_p3), %s1667_s12, 1  ;;  %v1677_v1 = vmov (!%p159_p3), 0.0   ;;  %vm1678_vm1 = vmmov (!%p159_p3), 0  }
   0x7   : > { %162 = sbr.rel (%p159_p3) target bundleno = 338 (0x152), region = 32  ;;  %1522 = vmatprep.subr.bf16.mxu0 (!%p159_p3), %v1677_v1  ;;  %v640_v2 = vsel (!%p159_p3), %vm638_vm0, %v561_v0, 0  ;;  %1524 = vmatprep.mubr.msk.bf16.mxu0 (!%p159_p3), %vm1678_vm1, %v1677_v1  ;;  %v1220_v3 = vld [vmem:[%s2024_s1] ss:$0 sm:$0xff] (!%p159_p3)  ;;  %v1233_v4 = vld [vmem:[%s2024_s1 + $0xd] ss:$0 sm:$0xff] (!%p159_p3) }
   0x8   : > { %1523 = vmatpush3.bf16.msra.mxu0 (!%p159_p3), %v640_v2  ;;  %1624 = vmatprep.subr.bf16.mxu1 (!%p159_p3), %v1677_v1  ;;  %v1221_v21 = vld [vmem:[%s2024_s1 + $0x1] ss:$0 sm:$0xff] (!%p159_p3)  ;;  %vm562_vm2 = vcmask (!%p159_p3), 31744   ;;  %v1234_v22 = vld [vmem:[%s2024_s1 + $0xe] ss:$0 sm:$0xff] (!%p159_p3)  ;;  %vm1075_vm3 = vcmask (!%p159_p3), 60416  }
   0x9   : > { %1625 = vmatpush3.bf16.msra.mxu1 (!%p159_p3), %v640_v2  ;;  %1576 = vmatprep.mubr.msk.bf16.mxu1 (!%p159_p3), %vm1678_vm1, %v1677_v1  ;;  %v1222_v35 = vld [vmem:[%s2024_s1 + $0x2] ss:$0 sm:$0xff] (!%p159_p3)  ;;  %v1235_v38 = vld [vmem:[%s2024_s1 + $0xf] ss:$0 sm:$0xff] (!%p159_p3)  ;;  %v1223_v49 = vld [vmem:[%s2024_s1 + $0x3] ss:$0 sm:$0xff] (!%p159_p3) }
   0xa   : > { %v1236_v52 = vld [vmem:[%s2024_s1 + $0x10] ss:$0 sm:$0xff] (!%p159_p3)  ;;  %v1224_v63 = vld [vmem:[%s2024_s1 + $0x4] ss:$0 sm:$0xff] (!%p159_p3) }
   0xe   : > { %s2032_s12 = smov (!%p191_p4, %s1667_s12), 1 }
   0xf   : > { %s1626_s18 = smul.u32 200, %s2032_s12 }
  0x11   : > { %s1734_s21 = scalar_lea.vmem %s2023_s0, %s1626_s18  ;;  %s1912_s4 = scalar_lea.vmem %s2026_s3, %s1626_s18 }
  0x12   : > { %v1373_v5 = vld [vmem:[%s1734_s21] sm:$0xff]   ;;  %v1484_v6 = vld [vmem:[%s1734_s21 + $0x68] sm:$0xff]   ;;  %v1485_v12 = vld [vmem:[%s1734_s21 + $0x70] sm:$0xff]  }
  0x13   : > { %v1472_v7 = vld [vmem:[%s1734_s21 + $0x8] sm:$0xff]   ;;  %v1374_v8 = vunpack.c.l.bf16 %v1373_v5  ;;  %v1375_v9 = vunpack.c.h.bf16 %v1373_v5  ;;  %v1426_v10 = vunpack.c.l.bf16 %v1484_v6  ;;  %v1427_v11 = vunpack.c.h.bf16 %v1484_v6  ;;  %v1473_v29 = vld [vmem:[%s1734_s21 + $0x10] sm:$0xff]   ;;  %v1486_v30 = vld [vmem:[%s1734_s21 + $0x78] sm:$0xff]  }
  0x14   : > { %v1378_v13 = vunpack.c.l.bf16 %v1472_v7  ;;  %v1379_v14 = vunpack.c.h.bf16 %v1472_v7  ;;  %v1430_v15 = vunpack.c.l.bf16 %v1485_v12  ;;  %v1431_v16 = vunpack.c.h.bf16 %v1485_v12  ;;  %v1474_v43 = vld [vmem:[%s1734_s21 + $0x18] sm:$0xff]   ;;  %v1487_v44 = vld [vmem:[%s1734_s21 + $0x80] sm:$0xff]   ;;  %v1488_v58 = vld [vmem:[%s1734_s21 + $0x88] sm:$0xff]  }
  0x15   : > { %v486_v17 = vmul.f32 %v1374_v8, %v1220_v3  ;;  %v487_v18 = vmul.f32 %v1375_v9, %v1220_v3  ;;  %v512_v19 = vmul.f32 %v1426_v10, %v1233_v4  ;;  %v513_v20 = vmul.f32 %v1427_v11, %v1233_v4  ;;  %v1475_v57 = vld [vmem:[%s1734_s21 + $0x20] sm:$0xff]   ;;  %v1237_v3 = vld [vmem:[%s2024_s1 + $0x11] ss:$0 sm:$0xff]  ;;  %v1476_v8 = vld [vmem:[%s1734_s21 + $0x28] sm:$0xff]  }
  0x16   : > { %v488_v25 = vmul.f32 %v1378_v13, %v1221_v21  ;;  %v489_v26 = vmul.f32 %v1379_v14, %v1221_v21  ;;  %v514_v27 = vmul.f32 %v1430_v15, %v1234_v22  ;;  %v515_v28 = vmul.f32 %v1431_v16, %v1234_v22  ;;  %v1489_v9 = vld [vmem:[%s1734_s21 + $0x90] sm:$0xff]   ;;  %v1225_v14 = vld [vmem:[%s2024_s1 + $0x5] ss:$0 sm:$0xff] }
  0x17   : > { %v536_v23 = vpack.c.bf16 %v487_v18, %v486_v17  ;;  %v549_v24 = vpack.c.bf16 %v513_v20, %v512_v19  ;;  %v1382_v31 = vunpack.c.l.bf16 %v1473_v29  ;;  %v1383_v32 = vunpack.c.h.bf16 %v1473_v29  ;;  %v1238_v17 = vld [vmem:[%s2024_s1 + $0x12] ss:$0 sm:$0xff] }
  0x18   : > { %v537_v33 = vpack.c.bf16 %v489_v26, %v488_v25  ;;  %v550_v34 = vpack.c.bf16 %v515_v28, %v514_v27  ;;  %v1434_v36 = vunpack.c.l.bf16 %v1486_v30  ;;  %v1435_v37 = vunpack.c.h.bf16 %v1486_v30  ;;  %v1477_v22 = vld [vmem:[%s1734_s21 + $0x30] sm:$0xff]   ;;  %v1226_v28 = vld [vmem:[%s2024_s1 + $0x6] ss:$0 sm:$0xff] }
  0x19   : > { %1525 = vmatmul.mubr.msk.bf16.vlgmr.msra.gmra.mrb[0].mxu0 %vm562_vm2, %v536_v23  ;;  %1577 = vmatmul.mubr.msk.bf16.vlgmr.msra.gmra.mrb[0].mxu1 %vm562_vm2, %v549_v24  ;;  %v490_v39 = vmul.f32 %v1382_v31, %v1222_v35  ;;  %v491_v40 = vmul.f32 %v1383_v32, %v1222_v35  ;;  %v1386_v45 = vunpack.c.l.bf16 %v1474_v43  ;;  %v1387_v46 = vunpack.c.h.bf16 %v1474_v43  ;;  %v1490_v23 = vld [vmem:[%s1734_s21 + $0x98] sm:$0xff]   ;;  %v1239_v31 = vld [vmem:[%s2024_s1 + $0x13] ss:$0 sm:$0xff] }
  0x1a   : > { %1528 = vmatprep.mubr.msk.bf16.mxu0 %vm1678_vm1, %v1677_v1  ;;  %1580 = vmatprep.mubr.msk.bf16.mxu1 %vm1678_vm1, %v1677_v1  ;;  %v516_v41 = vmul.f32 %v1434_v36, %v1235_v38  ;;  %v517_v42 = vmul.f32 %v1435_v37, %v1235_v38  ;;  %v1438_v50 = vunpack.c.l.bf16 %v1487_v44  ;;  %v1439_v51 = vunpack.c.h.bf16 %v1487_v44  ;;  %v1478_v36 = vld [vmem:[%s1734_s21 + $0x38] sm:$0xff]   ;;  %v1491_v37 = vld [vmem:[%s1734_s21 + $0xa0] sm:$0xff]  }
  0x1b   : > { %v538_v47 = vpack.c.bf16 %v491_v40, %v490_v39  ;;  %v492_v53 = vmul.f32 %v1386_v45, %v1223_v49  ;;  %v493_v54 = vmul.f32 %v1387_v46, %v1223_v49  ;;  %v1390_v59 = vunpack.c.l.bf16 %v1475_v57  ;;  %v1240_v45 = vld [vmem:[%s2024_s1 + $0x14] ss:$0 sm:$0xff] }
  0x1c   : > { %v551_v48 = vpack.c.bf16 %v517_v42, %v516_v41  ;;  %v518_v55 = vmul.f32 %v1438_v50, %v1236_v52  ;;  %v519_v56 = vmul.f32 %v1439_v51, %v1236_v52  ;;  %v1391_v60 = vunpack.c.h.bf16 %v1475_v57  ;;  %v1227_v42 = vld [vmem:[%s2024_s1 + $0x7] ss:$0 sm:$0xff]  ;;  %v1492_v51 = vld [vmem:[%s1734_s21 + $0xa8] sm:$0xff]  }
  0x1d   : > { %v539_v61 = vpack.c.bf16 %v493_v54, %v492_v53  ;;  %v1442_v0 = vunpack.c.l.bf16 %v1488_v58  ;;  %v1443_v2 = vunpack.c.h.bf16 %v1488_v58  ;;  %v494_v4 = vmul.f32 %v1390_v59, %v1224_v63  ;;  %v1479_v50 = vld [vmem:[%s1734_s21 + $0x40] sm:$0xff]   ;;  %v1241_v59 = vld [vmem:[%s2024_s1 + $0x15] ss:$0 sm:$0xff] }
  0x1e   : > { %v552_v62 = vpack.c.bf16 %v519_v56, %v518_v55  ;;  %v495_v5 = vmul.f32 %v1391_v60, %v1224_v63  ;;  %v1394_v10 = vunpack.c.l.bf16 %v1476_v8  ;;  %v1395_v11 = vunpack.c.h.bf16 %v1476_v8  ;;  %v1228_v56 = vld [vmem:[%s2024_s1 + $0x8] ss:$0 sm:$0xff] }
  0x1f   : > { %v520_v6 = vmul.f32 %v1442_v0, %v1237_v3  ;;  %v521_v7 = vmul.f32 %v1443_v2, %v1237_v3  ;;  %v1446_v15 = vunpack.c.l.bf16 %v1489_v9  ;;  %v1447_v16 = vunpack.c.h.bf16 %v1489_v9  ;;  %v1480_v0 = vld [vmem:[%s1734_s21 + $0x48] sm:$0xff]   ;;  %v1493_v2 = vld [vmem:[%s1734_s21 + $0xb0] sm:$0xff]  }
  0x20   : > { %v540_v12 = vpack.c.bf16 %v495_v5, %v494_v4  ;;  %v496_v18 = vmul.f32 %v1394_v10, %v1225_v14  ;;  %v497_v19 = vmul.f32 %v1395_v11, %v1225_v14  ;;  %v1398_v24 = vunpack.c.l.bf16 %v1477_v22  ;;  %v1242_v10 = vld [vmem:[%s2024_s1 + $0x16] ss:$0 sm:$0xff] }
  0x21   : > { %1529 = vmatmul.mubr.msk.bf16.gmra.mrb[4].mxu0 %vm562_vm2, %v537_v33  ;;  %1581 = vmatmul.mubr.msk.bf16.gmra.mrb[4].mxu1 %vm562_vm2, %v550_v34  ;;  %v553_v13 = vpack.c.bf16 %v521_v7, %v520_v6  ;;  %v522_v20 = vmul.f32 %v1446_v15, %v1238_v17  ;;  %v523_v21 = vmul.f32 %v1447_v16, %v1238_v17  ;;  %v1399_v25 = vunpack.c.h.bf16 %v1477_v22  ;;  %v1229_v7 = vld [vmem:[%s2024_s1 + $0x9] ss:$0 sm:$0xff]  ;;  %v1481_v15 = vld [vmem:[%s1734_s21 + $0x50] sm:$0xff]   ;;  %v1494_v16 = vld [vmem:[%s1734_s21 + $0xb8] sm:$0xff]  }
  0x22   : > { %1532 = vmatprep.mubr.msk.bf16.mxu0 %vm1678_vm1, %v1677_v1  ;;  %1584 = vmatprep.mubr.msk.bf16.mxu1 %vm1678_vm1, %v1677_v1  ;;  %v541_v26 = vpack.c.bf16 %v497_v19, %v496_v18  ;;  %v1450_v29 = vunpack.c.l.bf16 %v1490_v23  ;;  %v1451_v30 = vunpack.c.h.bf16 %v1490_v23  ;;  %v498_v32 = vmul.f32 %v1398_v24, %v1226_v28  ;;  %v1243_v24 = vld [vmem:[%s2024_s1 + $0x17] ss:$0 sm:$0xff] }
  0x23   : > { %v554_v27 = vpack.c.bf16 %v523_v21, %v522_v20  ;;  %v499_v33 = vmul.f32 %v1399_v25, %v1226_v28  ;;  %v1402_v38 = vunpack.c.l.bf16 %v1478_v36  ;;  %v1403_v39 = vunpack.c.h.bf16 %v1478_v36  ;;  %v1230_v21 = vld [vmem:[%s2024_s1 + $0xa] ss:$0 sm:$0xff] }
  0x24   : > { %v524_v34 = vmul.f32 %v1450_v29, %v1239_v31  ;;  %v525_v35 = vmul.f32 %v1451_v30, %v1239_v31  ;;  %v1454_v43 = vunpack.c.l.bf16 %v1491_v37  ;;  %v1455_v44 = vunpack.c.h.bf16 %v1491_v37  ;;  %v1482_v29 = vld [vmem:[%s1734_s21 + $0x58] sm:$0xff]   ;;  %v1495_v30 = vld [vmem:[%s1734_s21 + $0xc0] sm:$0xff]  }
  0x25   : > { %v542_v40 = vpack.c.bf16 %v499_v33, %v498_v32  ;;  %v500_v46 = vmul.f32 %v1402_v38, %v1227_v42  ;;  %v1406_v52 = vunpack.c.l.bf16 %v1479_v50  ;;  %v1407_v53 = vunpack.c.h.bf16 %v1479_v50  ;;  %v1244_v38 = vld [vmem:[%s2024_s1 + $0x18] ss:$0 sm:$0xff] }
  0x26   : > { %v555_v41 = vpack.c.bf16 %v525_v35, %v524_v34  ;;  %v527_v49 = vmul.f32 %v1455_v44, %v1240_v45  ;;  %v1458_v57 = vunpack.c.l.bf16 %v1492_v51  ;;  %v1459_v58 = vunpack.c.h.bf16 %v1492_v51  ;;  %v1231_v35 = vld [vmem:[%s2024_s1 + $0xb] ss:$0 sm:$0xff] }
  0x27   : > { %v502_v60 = vmul.f32 %v1406_v52, %v1228_v56  ;;  %v1410_v3 = vunpack.c.l.bf16 %v1480_v0  ;;  %v1411_v4 = vunpack.c.h.bf16 %v1480_v0  ;;  %v1462_v8 = vunpack.c.l.bf16 %v1493_v2 }
  0x28   : > { %v529_v63 = vmul.f32 %v1459_v58, %v1241_v59  ;;  %v1463_v9 = vunpack.c.h.bf16 %v1493_v2  ;;  %v1414_v17 = vunpack.c.l.bf16 %v1481_v15  ;;  %v1415_v18 = vunpack.c.h.bf16 %v1481_v15 }
  0x29   : > { %1533 = vmatmul.mubr.msk.bf16.gmra.mrb[8].mxu0 %vm562_vm2, %v538_v47  ;;  %1585 = vmatmul.mubr.msk.bf16.gmra.mrb[8].mxu1 %vm562_vm2, %v551_v48  ;;  %v501_v47 = vmul.f32 %v1403_v39, %v1227_v42  ;;  %v526_v48 = vmul.f32 %v1454_v43, %v1240_v45  ;;  %v504_v11 = vmul.f32 %v1410_v3, %v1229_v7  ;;  %v1466_v22 = vunpack.c.l.bf16 %v1494_v16  ;;  %v1483_v43 = vld [vmem:[%s1734_s21 + $0x60] sm:$0xff]  }
  0x2a   : > { %1536 = vmatprep.mubr.msk.bf16.mxu0 %vm1678_vm1, %v1677_v1  ;;  %1588 = vmatprep.mubr.msk.bf16.mxu1 %vm1678_vm1, %v1677_v1  ;;  %v531_v14 = vmul.f32 %v1463_v9, %v1242_v10  ;;  %v1467_v23 = vunpack.c.h.bf16 %v1494_v16  ;;  %v506_v25 = vmul.f32 %v1414_v17, %v1230_v21  ;;  %v1418_v31 = vunpack.c.l.bf16 %v1482_v29 }
  0x2b   : > { %v543_v54 = vpack.c.bf16 %v501_v47, %v500_v46  ;;  %v556_v55 = vpack.c.bf16 %v527_v49, %v526_v48  ;;  %v1419_v32 = vunpack.c.h.bf16 %v1482_v29  ;;  %v1470_v36 = vunpack.c.l.bf16 %v1495_v30  ;;  %v1232_v48 = vld [vmem:[%s2024_s1 + $0xc] ss:$0 sm:$0xff] }
  0x2c   : > { %v533_v28 = vmul.f32 %v1467_v23, %v1243_v24  ;;  %v1471_v37 = vunpack.c.h.bf16 %v1495_v30  ;;  %v508_v39 = vmul.f32 %v1418_v31, %v1231_v35  ;;  %v1422_v46 = vunpack.c.l.bf16 %v1483_v43 }
  0x2d   : > { %v1423_v47 = vunpack.c.h.bf16 %v1483_v43 }
  0x2e   : > { %v535_v42 = vmul.f32 %v1471_v37, %v1244_v38  ;;  %v510_v49 = vmul.f32 %v1422_v46, %v1232_v48 }
  0x2f   : > { %v511_v50 = vmul.f32 %v1423_v47, %v1232_v48 }
  0x31   : > { %1537 = vmatmul.mubr.msk.bf16.gmra.mrb[12].mxu0 %vm562_vm2, %v539_v61  ;;  %1589 = vmatmul.mubr.msk.bf16.gmra.mrb[12].mxu1 %vm562_vm2, %v552_v62  ;;  %v503_v61 = vmul.f32 %v1407_v53, %v1228_v56  ;;  %v528_v62 = vmul.f32 %v1458_v57, %v1241_v59  ;;  %v548_v51 = vpack.c.bf16 %v511_v50, %v510_v49 }
  0x32   : > { %1540 = vmatprep.mubr.msk.bf16.mxu0 %vm1678_vm1, %v1677_v1  ;;  %1592 = vmatprep.mubr.msk.bf16.mxu1 %vm1678_vm1, %v1677_v1 }
  0x33   : > { %v544_v5 = vpack.c.bf16 %v503_v61, %v502_v60  ;;  %v557_v6 = vpack.c.bf16 %v529_v63, %v528_v62 }
  0x39   : > { %1541 = vmatmul.mubr.msk.bf16.gmra.mrb[16].mxu0 %vm562_vm2, %v540_v12  ;;  %1593 = vmatmul.mubr.msk.bf16.gmra.mrb[16].mxu1 %vm562_vm2, %v553_v13  ;;  %v505_v12 = vmul.f32 %v1411_v4, %v1229_v7  ;;  %v530_v13 = vmul.f32 %v1462_v8, %v1242_v10 }
  0x3a   : > { %1544 = vmatprep.mubr.msk.bf16.mxu0 %vm1678_vm1, %v1677_v1  ;;  %1596 = vmatprep.mubr.msk.bf16.mxu1 %vm1678_vm1, %v1677_v1 }
  0x3b   : > { %v545_v19 = vpack.c.bf16 %v505_v12, %v504_v11  ;;  %v558_v20 = vpack.c.bf16 %v531_v14, %v530_v13 }
  0x41   : > { %1545 = vmatmul.mubr.msk.bf16.gmra.mrb[20].mxu0 %vm562_vm2, %v541_v26  ;;  %1597 = vmatmul.mubr.msk.bf16.gmra.mrb[20].mxu1 %vm562_vm2, %v554_v27  ;;  %v507_v26 = vmul.f32 %v1415_v18, %v1230_v21  ;;  %v532_v27 = vmul.f32 %v1466_v22, %v1243_v24 }
  0x42   : > { %1548 = vmatprep.mubr.msk.bf16.mxu0 %vm1678_vm1, %v1677_v1  ;;  %1600 = vmatprep.mubr.msk.bf16.mxu1 %vm1678_vm1, %v1677_v1 }
  0x43   : > { %v546_v33 = vpack.c.bf16 %v507_v26, %v506_v25  ;;  %v559_v34 = vpack.c.bf16 %v533_v28, %v532_v27 }
  0x49   : > { %1549 = vmatmul.mubr.msk.bf16.gmra.mrb[24].mxu0 %vm562_vm2, %v542_v40  ;;  %1601 = vmatmul.mubr.msk.bf16.gmra.mrb[24].mxu1 %vm562_vm2, %v555_v41  ;;  %v509_v40 = vmul.f32 %v1419_v32, %v1231_v35  ;;  %v534_v41 = vmul.f32 %v1470_v36, %v1244_v38 }
  0x4a   : > { %1552 = vmatprep.mubr.msk.bf16.mxu0 %vm1678_vm1, %v1677_v1  ;;  %1604 = vmatprep.mubr.msk.bf16.mxu1 %vm1678_vm1, %v1677_v1 }
  0x4b   : > { %v547_v44 = vpack.c.bf16 %v509_v40, %v508_v39  ;;  %v560_v45 = vpack.c.bf16 %v535_v42, %v534_v41 }
  0x51   : > { %1553 = vmatmul.mubr.msk.bf16.gmra.mrb[28].mxu0 %vm562_vm2, %v543_v54  ;;  %1605 = vmatmul.mubr.msk.bf16.gmra.mrb[28].mxu1 %vm562_vm2, %v556_v55 }
  0x52   : > { %1556 = vmatprep.mubr.msk.bf16.mxu0 %vm1678_vm1, %v1677_v1  ;;  %1608 = vmatprep.mubr.msk.bf16.mxu1 %vm1678_vm1, %v1677_v1 }
  0x59   : > { %1557 = vmatmul.mubr.msk.bf16.gmra.mrb[32].mxu0 %vm562_vm2, %v544_v5  ;;  %1609 = vmatmul.mubr.msk.bf16.gmra.mrb[32].mxu1 %vm562_vm2, %v557_v6 }
  0x5a   : > { %1560 = vmatprep.mubr.msk.bf16.mxu0 %vm1678_vm1, %v1677_v1  ;;  %1612 = vmatprep.mubr.msk.bf16.mxu1 %vm1678_vm1, %v1677_v1 }
  0x61   : > { %1561 = vmatmul.mubr.msk.bf16.gmra.mrb[36].mxu0 %vm562_vm2, %v545_v19  ;;  %1613 = vmatmul.mubr.msk.bf16.gmra.mrb[36].mxu1 %vm562_vm2, %v558_v20 }
  0x62   : > { %1564 = vmatprep.mubr.msk.bf16.mxu0 %vm1678_vm1, %v1677_v1  ;;  %1616 = vmatprep.mubr.msk.bf16.mxu1 %vm1678_vm1, %v1677_v1 }
  0x69   : > { %1565 = vmatmul.mubr.msk.bf16.gmra.mrb[40].mxu0 %vm562_vm2, %v546_v33  ;;  %1617 = vmatmul.mubr.msk.bf16.gmra.mrb[40].mxu1 %vm562_vm2, %v559_v34 }
  0x6a   : > { %1568 = vmatprep.mubr.msk.bf16.mxu0 %vm1678_vm1, %v1677_v1  ;;  %1620 = vmatprep.mubr.msk.bf16.mxu1 %vm1678_vm1, %v1677_v1 }
  0x71   : > { %1569 = vmatmul.mubr.msk.bf16.gmra.mrb[44].mxu0 %vm562_vm2, %v547_v44  ;;  %1621 = vmatmul.mubr.msk.bf16.gmra.mrb[44].mxu1 %vm562_vm2, %v560_v45 }
  0x72   : > { %1572 = vmatprep.mubr.msk.bf16.mxu0 %vm1678_vm1, %v1677_v1 }
  0x79   : > { %1573 = vmatmul.mubr.msk.bf16.gmra.mrb[48].mxu0 %vm562_vm2, %v548_v51 }
  0xec   : > { %v676_v52 = vpop.f32.mrb[0].mxu0  ;;  %v780_v53 = vpop.f32.mrb[0].mxu1 }
  0xed   : > { %v1322_v54 = vpack.c.bf16 %v676_v52, %v676_v52  ;;  %v1526_v55 = vpop.f32.mrb[1].mxu0  ;;  %v1348_v56 = vpack.c.bf16 %v780_v53, %v780_v53  ;;  %v1578_v1 = vpop.f32.mrb[1].mxu1 }
  0xee   : > { %v679_v57 = vpop.f32.mrb[2].mxu0  ;;  %v783_v58 = vpop.f32.mrb[2].mxu1 }
  0xef   : > { %1076 = vst.msk [vmem:[%s1912_s4] sm:$0xf] %vm1075_vm3, %v1322_v54  ;;  %v1323_v59 = vpack.c.bf16 %v679_v57, %v679_v57  ;;  %v1527_v60 = vpop.f32.mrb[3].mxu0  ;;  %1102 = vst.msk [vmem:[%s1912_s4 + $0x68] sm:$0xf] %vm1075_vm3, %v1348_v56  ;;  %v1349_v61 = vpack.c.bf16 %v783_v58, %v783_v58  ;;  %v1579_v62 = vpop.f32.mrb[3].mxu1 }
  0xf1   : > { %1077 = vst.msk [vmem:[%s1912_s4 + $0x4] sm:$0xf] %vm1075_vm3, %v1323_v59  ;;  %1103 = vst.msk [vmem:[%s1912_s4 + $0x6c] sm:$0xf] %vm1075_vm3, %v1349_v61 }
  0xf4   : > { %v684_v63 = vpop.f32.mrb[4].mxu0  ;;  %v788_v0 = vpop.f32.mrb[4].mxu1 }
  0xf5   : > { %v1324_v2 = vpack.c.bf16 %v684_v63, %v684_v63  ;;  %v1530_v3 = vpop.f32.mrb[5].mxu0  ;;  %v1350_v4 = vpack.c.bf16 %v788_v0, %v788_v0  ;;  %v1582_v5 = vpop.f32.mrb[5].mxu1 }
  0xf6   : > { %v687_v6 = vpop.f32.mrb[6].mxu0  ;;  %v791_v7 = vpop.f32.mrb[6].mxu1 }
  0xf7   : > { %1078 = vst.msk [vmem:[%s1912_s4 + $0x8] sm:$0xf] %vm1075_vm3, %v1324_v2  ;;  %v1325_v8 = vpack.c.bf16 %v687_v6, %v687_v6  ;;  %v1531_v9 = vpop.f32.mrb[7].mxu0  ;;  %1104 = vst.msk [vmem:[%s1912_s4 + $0x70] sm:$0xf] %vm1075_vm3, %v1350_v4  ;;  %v1351_v10 = vpack.c.bf16 %v791_v7, %v791_v7  ;;  %v1583_v11 = vpop.f32.mrb[7].mxu1 }
  0xf9   : > { %1079 = vst.msk [vmem:[%s1912_s4 + $0xc] sm:$0xf] %vm1075_vm3, %v1325_v8  ;;  %1105 = vst.msk [vmem:[%s1912_s4 + $0x74] sm:$0xf] %vm1075_vm3, %v1351_v10 }
  0xfc   : > { %v692_v12 = vpop.f32.mrb[8].mxu0  ;;  %v796_v13 = vpop.f32.mrb[8].mxu1 }
  0xfd   : > { %v1326_v14 = vpack.c.bf16 %v692_v12, %v692_v12  ;;  %v1534_v15 = vpop.f32.mrb[9].mxu0  ;;  %v1352_v16 = vpack.c.bf16 %v796_v13, %v796_v13  ;;  %v1586_v17 = vpop.f32.mrb[9].mxu1 }
  0xfe   : > { %v695_v18 = vpop.f32.mrb[10].mxu0  ;;  %v799_v19 = vpop.f32.mrb[10].mxu1 }
  0xff   : > { %1080 = vst.msk [vmem:[%s1912_s4 + $0x10] sm:$0xf] %vm1075_vm3, %v1326_v14  ;;  %v1327_v20 = vpack.c.bf16 %v695_v18, %v695_v18  ;;  %v1535_v21 = vpop.f32.mrb[11].mxu0  ;;  %1106 = vst.msk [vmem:[%s1912_s4 + $0x78] sm:$0xf] %vm1075_vm3, %v1352_v16  ;;  %v1353_v22 = vpack.c.bf16 %v799_v19, %v799_v19  ;;  %v1587_v23 = vpop.f32.mrb[11].mxu1 }
 0x101   : > { %1081 = vst.msk [vmem:[%s1912_s4 + $0x14] sm:$0xf] %vm1075_vm3, %v1327_v20  ;;  %1107 = vst.msk [vmem:[%s1912_s4 + $0x7c] sm:$0xf] %vm1075_vm3, %v1353_v22 }
 0x104   : > { %v700_v24 = vpop.f32.mrb[12].mxu0  ;;  %v804_v25 = vpop.f32.mrb[12].mxu1 }
 0x105   : > { %v1328_v26 = vpack.c.bf16 %v700_v24, %v700_v24  ;;  %v1538_v27 = vpop.f32.mrb[13].mxu0  ;;  %v1354_v28 = vpack.c.bf16 %v804_v25, %v804_v25  ;;  %v1590_v29 = vpop.f32.mrb[13].mxu1 }
 0x106   : > { %v703_v30 = vpop.f32.mrb[14].mxu0  ;;  %v807_v31 = vpop.f32.mrb[14].mxu1 }
 0x107   : > { %1082 = vst.msk [vmem:[%s1912_s4 + $0x18] sm:$0xf] %vm1075_vm3, %v1328_v26  ;;  %v1329_v32 = vpack.c.bf16 %v703_v30, %v703_v30  ;;  %v1539_v33 = vpop.f32.mrb[15].mxu0  ;;  %1108 = vst.msk [vmem:[%s1912_s4 + $0x80] sm:$0xf] %vm1075_vm3, %v1354_v28  ;;  %v1355_v34 = vpack.c.bf16 %v807_v31, %v807_v31  ;;  %v1591_v35 = vpop.f32.mrb[15].mxu1 }
 0x109   : > { %1083 = vst.msk [vmem:[%s1912_s4 + $0x1c] sm:$0xf] %vm1075_vm3, %v1329_v32  ;;  %1109 = vst.msk [vmem:[%s1912_s4 + $0x84] sm:$0xf] %vm1075_vm3, %v1355_v34 }
 0x10c   : > { %v708_v36 = vpop.f32.mrb[16].mxu0  ;;  %v812_v37 = vpop.f32.mrb[16].mxu1 }
 0x10d   : > { %v1330_v38 = vpack.c.bf16 %v708_v36, %v708_v36  ;;  %v1542_v39 = vpop.f32.mrb[17].mxu0  ;;  %v1356_v40 = vpack.c.bf16 %v812_v37, %v812_v37  ;;  %v1594_v41 = vpop.f32.mrb[17].mxu1 }
 0x10e   : > { %v711_v42 = vpop.f32.mrb[18].mxu0  ;;  %v815_v43 = vpop.f32.mrb[18].mxu1 }
 0x10f   : > { %1084 = vst.msk [vmem:[%s1912_s4 + $0x20] sm:$0xf] %vm1075_vm3, %v1330_v38  ;;  %v1331_v44 = vpack.c.bf16 %v711_v42, %v711_v42  ;;  %v1543_v45 = vpop.f32.mrb[19].mxu0  ;;  %1110 = vst.msk [vmem:[%s1912_s4 + $0x88] sm:$0xf] %vm1075_vm3, %v1356_v40  ;;  %v1357_v46 = vpack.c.bf16 %v815_v43, %v815_v43  ;;  %v1595_v47 = vpop.f32.mrb[19].mxu1 }
 0x111   : > { %1085 = vst.msk [vmem:[%s1912_s4 + $0x24] sm:$0xf] %vm1075_vm3, %v1331_v44  ;;  %1111 = vst.msk [vmem:[%s1912_s4 + $0x8c] sm:$0xf] %vm1075_vm3, %v1357_v46 }
 0x114   : > { %v716_v48 = vpop.f32.mrb[20].mxu0  ;;  %v820_v49 = vpop.f32.mrb[20].mxu1 }
 0x115   : > { %v1332_v50 = vpack.c.bf16 %v716_v48, %v716_v48  ;;  %v1546_v51 = vpop.f32.mrb[21].mxu0  ;;  %v1358_v52 = vpack.c.bf16 %v820_v49, %v820_v49  ;;  %v1598_v53 = vpop.f32.mrb[21].mxu1 }
 0x116   : > { %v719_v54 = vpop.f32.mrb[22].mxu0  ;;  %v823_v55 = vpop.f32.mrb[22].mxu1 }
 0x117   : > { %1086 = vst.msk [vmem:[%s1912_s4 + $0x28] sm:$0xf] %vm1075_vm3, %v1332_v50  ;;  %v1333_v56 = vpack.c.bf16 %v719_v54, %v719_v54  ;;  %v1547_v1 = vpop.f32.mrb[23].mxu0  ;;  %1112 = vst.msk [vmem:[%s1912_s4 + $0x90] sm:$0xf] %vm1075_vm3, %v1358_v52  ;;  %v1359_v57 = vpack.c.bf16 %v823_v55, %v823_v55  ;;  %v1599_v58 = vpop.f32.mrb[23].mxu1 }
 0x119   : > { %1087 = vst.msk [vmem:[%s1912_s4 + $0x2c] sm:$0xf] %vm1075_vm3, %v1333_v56  ;;  %1113 = vst.msk [vmem:[%s1912_s4 + $0x94] sm:$0xf] %vm1075_vm3, %v1359_v57 }
 0x11c   : > { %v724_v59 = vpop.f32.mrb[24].mxu0  ;;  %v828_v60 = vpop.f32.mrb[24].mxu1 }
 0x11d   : > { %v1334_v61 = vpack.c.bf16 %v724_v59, %v724_v59  ;;  %v1550_v62 = vpop.f32.mrb[25].mxu0  ;;  %v1360_v63 = vpack.c.bf16 %v828_v60, %v828_v60  ;;  %v1602_v0 = vpop.f32.mrb[25].mxu1 }
 0x11e   : > { %v727_v2 = vpop.f32.mrb[26].mxu0  ;;  %v831_v3 = vpop.f32.mrb[26].mxu1 }
 0x11f   : > { %1088 = vst.msk [vmem:[%s1912_s4 + $0x30] sm:$0xf] %vm1075_vm3, %v1334_v61  ;;  %v1335_v4 = vpack.c.bf16 %v727_v2, %v727_v2  ;;  %v1551_v5 = vpop.f32.mrb[27].mxu0  ;;  %1114 = vst.msk [vmem:[%s1912_s4 + $0x98] sm:$0xf] %vm1075_vm3, %v1360_v63  ;;  %v1361_v6 = vpack.c.bf16 %v831_v3, %v831_v3  ;;  %v1603_v7 = vpop.f32.mrb[27].mxu1 }
 0x121   : > { %1089 = vst.msk [vmem:[%s1912_s4 + $0x34] sm:$0xf] %vm1075_vm3, %v1335_v4  ;;  %1115 = vst.msk [vmem:[%s1912_s4 + $0x9c] sm:$0xf] %vm1075_vm3, %v1361_v6 }
 0x124   : > { %v732_v8 = vpop.f32.mrb[28].mxu0  ;;  %v836_v9 = vpop.f32.mrb[28].mxu1 }
 0x125   : > { %v1336_v10 = vpack.c.bf16 %v732_v8, %v732_v8  ;;  %v1554_v11 = vpop.f32.mrb[29].mxu0  ;;  %v1362_v12 = vpack.c.bf16 %v836_v9, %v836_v9  ;;  %v1606_v13 = vpop.f32.mrb[29].mxu1 }
 0x126   : > { %v735_v14 = vpop.f32.mrb[30].mxu0  ;;  %v839_v15 = vpop.f32.mrb[30].mxu1 }
 0x127   : > { %1090 = vst.msk [vmem:[%s1912_s4 + $0x38] sm:$0xf] %vm1075_vm3, %v1336_v10  ;;  %v1337_v16 = vpack.c.bf16 %v735_v14, %v735_v14  ;;  %v1555_v17 = vpop.f32.mrb[31].mxu0  ;;  %1116 = vst.msk [vmem:[%s1912_s4 + $0xa0] sm:$0xf] %vm1075_vm3, %v1362_v12  ;;  %v1363_v18 = vpack.c.bf16 %v839_v15, %v839_v15  ;;  %v1607_v19 = vpop.f32.mrb[31].mxu1 }
 0x129   : > { %1091 = vst.msk [vmem:[%s1912_s4 + $0x3c] sm:$0xf] %vm1075_vm3, %v1337_v16  ;;  %1117 = vst.msk [vmem:[%s1912_s4 + $0xa4] sm:$0xf] %vm1075_vm3, %v1363_v18 }
 0x12c   : > { %v740_v20 = vpop.f32.mrb[32].mxu0  ;;  %v844_v21 = vpop.f32.mrb[32].mxu1 }
 0x12d   : > { %v1338_v22 = vpack.c.bf16 %v740_v20, %v740_v20  ;;  %v1558_v23 = vpop.f32.mrb[33].mxu0  ;;  %v1364_v24 = vpack.c.bf16 %v844_v21, %v844_v21  ;;  %v1610_v25 = vpop.f32.mrb[33].mxu1 }
 0x12e   : > { %v743_v26 = vpop.f32.mrb[34].mxu0  ;;  %v847_v27 = vpop.f32.mrb[34].mxu1 }
 0x12f   : > { %1092 = vst.msk [vmem:[%s1912_s4 + $0x40] sm:$0xf] %vm1075_vm3, %v1338_v22  ;;  %v1339_v28 = vpack.c.bf16 %v743_v26, %v743_v26  ;;  %v1559_v29 = vpop.f32.mrb[35].mxu0  ;;  %1118 = vst.msk [vmem:[%s1912_s4 + $0xa8] sm:$0xf] %vm1075_vm3, %v1364_v24  ;;  %v1365_v30 = vpack.c.bf16 %v847_v27, %v847_v27  ;;  %v1611_v31 = vpop.f32.mrb[35].mxu1 }
 0x131   : > { %1093 = vst.msk [vmem:[%s1912_s4 + $0x44] sm:$0xf] %vm1075_vm3, %v1339_v28  ;;  %1119 = vst.msk [vmem:[%s1912_s4 + $0xac] sm:$0xf] %vm1075_vm3, %v1365_v30 }
 0x134   : > { %v748_v32 = vpop.f32.mrb[36].mxu0  ;;  %v852_v33 = vpop.f32.mrb[36].mxu1 }
 0x135   : > { %v1340_v34 = vpack.c.bf16 %v748_v32, %v748_v32  ;;  %v1562_v35 = vpop.f32.mrb[37].mxu0  ;;  %v1366_v36 = vpack.c.bf16 %v852_v33, %v852_v33  ;;  %v1614_v37 = vpop.f32.mrb[37].mxu1 }
 0x136   : > { %v751_v38 = vpop.f32.mrb[38].mxu0  ;;  %v855_v39 = vpop.f32.mrb[38].mxu1 }
 0x137   : > { %1094 = vst.msk [vmem:[%s1912_s4 + $0x48] sm:$0xf] %vm1075_vm3, %v1340_v34  ;;  %v1341_v40 = vpack.c.bf16 %v751_v38, %v751_v38  ;;  %v1563_v41 = vpop.f32.mrb[39].mxu0  ;;  %1120 = vst.msk [vmem:[%s1912_s4 + $0xb0] sm:$0xf] %vm1075_vm3, %v1366_v36  ;;  %v1367_v42 = vpack.c.bf16 %v855_v39, %v855_v39  ;;  %v1615_v43 = vpop.f32.mrb[39].mxu1 }
 0x139   : > { %1095 = vst.msk [vmem:[%s1912_s4 + $0x4c] sm:$0xf] %vm1075_vm3, %v1341_v40  ;;  %1121 = vst.msk [vmem:[%s1912_s4 + $0xb4] sm:$0xf] %vm1075_vm3, %v1367_v42 }
 0x13c   : > { %v756_v44 = vpop.f32.mrb[40].mxu0  ;;  %v860_v45 = vpop.f32.mrb[40].mxu1 }
 0x13d   : > { %v1342_v46 = vpack.c.bf16 %v756_v44, %v756_v44  ;;  %v1566_v47 = vpop.f32.mrb[41].mxu0  ;;  %v1368_v48 = vpack.c.bf16 %v860_v45, %v860_v45  ;;  %v1618_v49 = vpop.f32.mrb[41].mxu1 }
 0x13e   : > { %v759_v50 = vpop.f32.mrb[42].mxu0  ;;  %v863_v51 = vpop.f32.mrb[42].mxu1 }
 0x13f   : > { %1096 = vst.msk [vmem:[%s1912_s4 + $0x50] sm:$0xf] %vm1075_vm3, %v1342_v46  ;;  %v1343_v52 = vpack.c.bf16 %v759_v50, %v759_v50  ;;  %v1567_v53 = vpop.f32.mrb[43].mxu0  ;;  %1122 = vst.msk [vmem:[%s1912_s4 + $0xb8] sm:$0xf] %vm1075_vm3, %v1368_v48  ;;  %v1369_v54 = vpack.c.bf16 %v863_v51, %v863_v51  ;;  %v1619_v55 = vpop.f32.mrb[43].mxu1 }
 0x141   : > { %1097 = vst.msk [vmem:[%s1912_s4 + $0x54] sm:$0xf] %vm1075_vm3, %v1343_v52  ;;  %1123 = vst.msk [vmem:[%s1912_s4 + $0xbc] sm:$0xf] %vm1075_vm3, %v1369_v54 }
 0x144   : > { %v764_v56 = vpop.f32.mrb[44].mxu0  ;;  %v868_v1 = vpop.f32.mrb[44].mxu1 }
 0x145   : > { %v1344_v57 = vpack.c.bf16 %v764_v56, %v764_v56  ;;  %v1570_v58 = vpop.f32.mrb[45].mxu0  ;;  %v1370_v59 = vpack.c.bf16 %v868_v1, %v868_v1  ;;  %v1622_v60 = vpop.f32.mrb[45].mxu1 }
 0x146   : > { %v767_v61 = vpop.f32.mrb[46].mxu0  ;;  %v871_v62 = vpop.f32.mrb[46].mxu1 }
 0x147   : > { %1098 = vst.msk [vmem:[%s1912_s4 + $0x58] sm:$0xf] %vm1075_vm3, %v1344_v57  ;;  %v1345_v63 = vpack.c.bf16 %v767_v61, %v767_v61  ;;  %v1571_v0 = vpop.f32.mrb[47].mxu0  ;;  %1124 = vst.msk [vmem:[%s1912_s4 + $0xc0] sm:$0xf] %vm1075_vm3, %v1370_v59  ;;  %v1371_v2 = vpack.c.bf16 %v871_v62, %v871_v62  ;;  %v1623_v3 = vpop.f32.mrb[47].mxu1 }
 0x149   : > { %1099 = vst.msk [vmem:[%s1912_s4 + $0x5c] sm:$0xf] %vm1075_vm3, %v1345_v63  ;;  %1125 = vst.msk [vmem:[%s1912_s4 + $0xc4] sm:$0xf] %vm1075_vm3, %v1371_v2 }
 0x14c   : > { %v772_v4 = vpop.f32.mrb[48].mxu0 }
 0x14d   : > { %v1346_v5 = vpack.c.bf16 %v772_v4, %v772_v4  ;;  %v1574_v6 = vpop.f32.mrb[49].mxu0 }
 0x14e   : > { %v775_v7 = vpop.f32.mrb[50].mxu0 }
 0x14f   : > { %1100 = vst.msk [vmem:[%s1912_s4 + $0x60] sm:$0xf] %vm1075_vm3, %v1346_v5  ;;  %v1347_v8 = vpack.c.bf16 %v775_v7, %v775_v7  ;;  %v1575_v9 = vpop.f32.mrb[51].mxu0 }
 0x151   : > { %1101 = vst.msk [vmem:[%s1912_s4 + $0x64] sm:$0xf] %vm1075_vm3, %v1347_v8 }
 0x152 PF: > { %s13_s14 = sadd.s32 1, %s1675_s14   ;;  %s2027_s12 = smov %s1671_s13 }
 0x153   : > { %p10_p5 = scmp.ge.s32.totalorder %s13_s14, 4   ;;  %s2028_s13 = smov %s2030_s15 }
 0x155   :  { %12 = sbr.rel (!%p10_p5) target bundleno = 2 (0x2), region = 62 }

// kernel: tcn_gcn_unit_forward.3
= control target key start
LH: loop header
LB: loop body
LE: loop exit
PB: predicated region body
PF: predicated region fallthrough
CT: control target
= control target key end

     0   :  { %s3272_s27 = smov 0   ;;  %s3274_s28 = smov 0   ;;  %s4068_s0 = inlined_call_operand.vmem [shape: bf16[2,25,16,8], index: 0, kind: input, shape index: {}]   ;;  %s4069_s1 = inlined_call_operand.vmem [shape: bf16[2,25,16,4], index: 1, kind: input, shape index: {}]   ;;  %s4070_s2 = inlined_call_operand.vmem [shape: f32[25,1,8], index: 2, kind: input, shape index: {}]   ;;  %s4071_s3 = inlined_call_operand.vmem [shape: f32[25,1,8], index: 3, kind: input, shape index: {}]   ;;  %s4072_s4 = inlined_call_operand.vmem [shape: f32[1,16,16], index: 4, kind: input, shape index: {}]   ;;  %s4073_s5 = inlined_call_operand.vmem [shape: bf16[4,16], index: 5, kind: input, shape index: {}]   ;;  %s4074_s6 = inlined_call_operand.vmem [shape: bf16[8,8], index: 6, kind: input, shape index: {}]   ;;  %s4075_s7 = inlined_call_operand.vmem [shape: f32[2,1,8], index: 7, kind: input, shape index: {}]   ;;  %s4076_s8 = inlined_call_operand.vmem [shape: f32[2,25,16,8], index: 8, kind: output, shape index: {}]  }
   0x1   :  { %s3276_s29 = smov 0  }
   0x2 LB: > { %s27_s30 = sadd.s32 1, %s3218_s28  ;;  %p2631_p0 = scmp.ge.s32.totalorder %s3222_s29, 1  ;;  %s3222_s29 = sphi %s3276_s29, %s18_s29   ;;  %s3218_s28 = sphi %s3274_s28, %s4078_s28   ;;  %s3214_s27 = sphi %s3272_s27, %s4077_s27  }
   0x3   : > { %p28_p1 = scmp.ge.s32.totalorder %s27_s30, 2  ;;  %p311_p2 = scmp.lt.s32.totalorder %s3222_s29, 3 }
   0x5   : > { %s4080_s30 = smov (%p28_p1, %s27_s30), 0  ;;  %p312_p3 = pnand %p2631_p0, %p311_p2 }
   0x6   : > { %v454_v0 = vld [vmem:[%s4073_s5] sm:$0x3] (!%p312_p3)  ;;  %vm656_vm0 = vcmask (!%p312_p3), 1041408   ;;  %p368_p4 = scmp.lt.s32.totalorder (!%p312_p3), %s3214_s27, 1  ;;  %v3224_v1 = vmov (!%p312_p3), 0.0   ;;  %vm3225_vm1 = vmmov (!%p312_p3), 0  }
   0x7   : > { %315 = sbr.rel (%p312_p3) target bundleno = 660 (0x294), region = 52  ;;  %2940 = vmatprep.subr.bf16.mxu0 (!%p312_p3), %v3224_v1  ;;  %v658_v2 = vsel (!%p312_p3), %vm656_vm0, %v454_v0, 0  ;;  %2942 = vmatprep.mubr.msk.bf16.mxu0 (!%p312_p3), %vm3225_vm1, %v3224_v1  ;;  %vm580_vm2 = vcmask (!%p312_p3), 31744   ;;  %v3356_v14 = vld [vmem:[%s4072_s4] sm:$0xff] (!%p312_p3)  ;;  %s3226_s17 = smov (!%p312_p3), 120   ;;  %v3364_v16 = vld [vmem:[%s4072_s4 + $0x8] sm:$0xff] (!%p312_p3) }
   0x8   : > { %2941 = vmatpush3.bf16.msra.mxu0 (!%p312_p3), %v658_v2  ;;  %3042 = vmatprep.subr.bf16.mxu1 (!%p312_p3), %v3224_v1  ;;  %v1620_v17 = vld [vmem:[%s4074_s6] sm:$0xf] (!%p312_p3)  ;;  %vm1697_vm3 = vcmask (!%p312_p3), 1043456   ;;  %vm1621_vm4 = vcmask (!%p312_p3), 64512  }
   0x9   : > { %3044 = vmatprep.mubr.msk.bf16.mxu1 (!%p312_p3), %vm3225_vm1, %v3224_v1  ;;  %1936 = vrot.lane.b32.xlu0 (!%p312_p3), %v3356_v14, %s3226_s17  ;;  %v1699_v18 = vsel (!%p312_p3), %vm1697_vm3, %v1620_v17, 0  ;;  %v2685_v34 = vld [vmem:[%s4070_s2] ss:$0 sm:$0xff] (!%p312_p3)  ;;  %v2686_v42 = vld [vmem:[%s4070_s2 + $0x1] ss:$0 sm:$0xff] (!%p312_p3) }
   0xa   : > { %3043 = vmatpush3.bf16.msra.mxu1 (!%p312_p3), %v1699_v18  ;;  %v2710_v37 = vld [vmem:[%s4071_s3] ss:$0 sm:$0xff] (!%p312_p3)  ;;  %v2711_v50 = vld [vmem:[%s4071_s3 + $0x1] ss:$0 sm:$0xff] (!%p312_p3)  ;;  %v2687_v59 = vld [vmem:[%s4070_s2 + $0x2] ss:$0 sm:$0xff] (!%p312_p3) }
   0xb   : > { %v2688_v18 = vld [vmem:[%s4070_s2 + $0x3] ss:$0 sm:$0xff] (!%p312_p3) }
   0xd   : > { %1938 = vrot.lane.b32.xlu0 (!%p312_p3), %v3364_v16, %s3226_s17 }
   0xe   : > { %s4082_s27 = smov (!%p368_p4, %s3214_s27), 1 }
   0xf   : > { %s3144_s11 = smul.u32 200, %s4082_s27 }
  0x10   : > { %s3145_s18 = smul.u32 400, %s4082_s27 }
  0x11   : > { %s3307_s14 = scalar_lea.vmem %s4069_s1, %s3144_s11  ;;  %s3429_s24 = scalar_lea.vmem %s4068_s0, %s3144_s11 }
  0x12   : > { %v3173_v3 = vld [vmem:[%s3307_s14] sm:$0xff]   ;;  %v3174_v4 = vld [vmem:[%s3307_s14 + $0x8] sm:$0xff]   ;;  %v3175_v5 = vld [vmem:[%s3307_s14 + $0x10] sm:$0xff]   ;;  %s3814_s21 = scalar_lea.vmem %s4076_s8, %s3145_s18 }
  0x13   : > { %2943 = vmatmul.mubr.msk.bf16.vlgmr.msra.gmra.mrb[0].mxu0 %vm580_vm2, %v3173_v3  ;;  %v3176_v6 = vld [vmem:[%s3307_s14 + $0x18] sm:$0xff]   ;;  %v3177_v7 = vld [vmem:[%s3307_s14 + $0x20] sm:$0xff]   ;;  %v3178_v8 = vld [vmem:[%s3307_s14 + $0x28] sm:$0xff]  }
  0x14   : > { %2946 = vmatprep.mubr.msk.bf16.mxu0 %vm3225_vm1, %v3224_v1  ;;  %v3179_v9 = vld [vmem:[%s3307_s14 + $0x30] sm:$0xff]   ;;  %v3180_v10 = vld [vmem:[%s3307_s14 + $0x38] sm:$0xff]   ;;  %v3181_v11 = vld [vmem:[%s3307_s14 + $0x40] sm:$0xff]  }
  0x15   : > { %v3182_v12 = vld [vmem:[%s3307_s14 + $0x48] sm:$0xff]   ;;  %v3183_v13 = vld [vmem:[%s3307_s14 + $0x50] sm:$0xff]   ;;  %v3184_v15 = vld [vmem:[%s3307_s14 + $0x58] sm:$0xff]  }
  0x16   : > { %v3185_v19 = vld [vmem:[%s3307_s14 + $0x60] sm:$0xff]   ;;  %v3186_v20 = vld [vmem:[%s3307_s14 + $0x68] sm:$0xff]   ;;  %v3187_v21 = vld [vmem:[%s3307_s14 + $0x70] sm:$0xff]  }
  0x17   : > { %v3188_v22 = vld [vmem:[%s3307_s14 + $0x78] sm:$0xff]   ;;  %v3189_v23 = vld [vmem:[%s3307_s14 + $0x80] sm:$0xff]   ;;  %v3190_v24 = vld [vmem:[%s3307_s14 + $0x88] sm:$0xff]  }
  0x18   : > { %v3191_v25 = vld [vmem:[%s3307_s14 + $0x90] sm:$0xff]   ;;  %v3192_v26 = vld [vmem:[%s3307_s14 + $0x98] sm:$0xff]   ;;  %v3193_v27 = vld [vmem:[%s3307_s14 + $0xa0] sm:$0xff]  }
  0x19   : > { %v3194_v28 = vld [vmem:[%s3307_s14 + $0xa8] sm:$0xff]   ;;  %v3195_v29 = vld [vmem:[%s3307_s14 + $0xb0] sm:$0xff]   ;;  %v3196_v30 = vld [vmem:[%s3307_s14 + $0xb8] sm:$0xff]  }
  0x1a   : > { %v3197_v31 = vld [vmem:[%s3307_s14 + $0xc0] sm:$0xff]   ;;  %v2864_v38 = vld [vmem:[%s3429_s24 + $0x8] sm:$0xff]   ;;  %v2865_v51 = vld [vmem:[%s3429_s24 + $0x10] sm:$0xff]  }
  0x1b   : > { %2947 = vmatmul.mubr.msk.bf16.gmra.mrb[4].mxu0 %vm580_vm2, %v3174_v4  ;;  %v2765_v32 = vld [vmem:[%s3429_s24] sm:$0xff]   ;;  %v2770_v41 = vunpack.c.l.bf16 %v2864_v38  ;;  %v2771_v44 = vunpack.c.h.bf16 %v2864_v38  ;;  %v2774_v58 = vunpack.c.l.bf16 %v2865_v51  ;;  %v2775_v63 = vunpack.c.h.bf16 %v2865_v51 }
  0x1c   : > { %2950 = vmatprep.mubr.msk.bf16.mxu0 %vm3225_vm1, %v3224_v1  ;;  %v2766_v33 = vunpack.c.l.bf16 %v2765_v32  ;;  %v2767_v35 = vunpack.c.h.bf16 %v2765_v32  ;;  %v2689_v38 = vld [vmem:[%s4070_s2 + $0x4] ss:$0 sm:$0xff] }
  0x1d   : > { %v1170_v48 = vmul.f32 %v2770_v41, %v2686_v42  ;;  %v1171_v55 = vmul.f32 %v2771_v44, %v2686_v42 }
  0x1e   : > { %v1168_v36 = vmul.f32 %v2766_v33, %v2685_v34  ;;  %v1169_v39 = vmul.f32 %v2767_v35, %v2685_v34 }
  0x1f   : > { %v1395_v57 = vadd.f32 %v2711_v50, %v1170_v48  ;;  %v1396_v62 = vadd.f32 %v2711_v50, %v1171_v55  ;;  %v2868_v50 = vld [vmem:[%s3429_s24 + $0x28] sm:$0xff]  }
  0x20   : > { %v1393_v40 = vadd.f32 %v2710_v37, %v1168_v36  ;;  %v1394_v43 = vadd.f32 %v2710_v37, %v1169_v39 }
  0x23   : > { %2951 = vmatmul.mubr.msk.bf16.gmra.mrb[8].mxu0 %vm580_vm2, %v3175_v5  ;;  %v1172_v5 = vmul.f32 %v2774_v58, %v2687_v59  ;;  %v2690_v58 = vld [vmem:[%s4070_s2 + $0x5] ss:$0 sm:$0xff] }
  0x24   : > { %2954 = vmatprep.mubr.msk.bf16.mxu0 %vm3225_vm1, %v3224_v1 }
  0x2b   : > { %2955 = vmatmul.mubr.msk.bf16.gmra.mrb[12].mxu0 %vm580_vm2, %v3176_v6 }
  0x2c   : > { %2958 = vmatprep.mubr.msk.bf16.mxu0 %vm3225_vm1, %v3224_v1 }
  0x33   : > { %2959 = vmatmul.mubr.msk.bf16.gmra.mrb[16].mxu0 %vm580_vm2, %v3177_v7  ;;  %v2712_v7 = vld [vmem:[%s4071_s3 + $0x2] ss:$0 sm:$0xff] }
  0x34   : > { %2962 = vmatprep.mubr.msk.bf16.mxu0 %vm3225_vm1, %v3224_v1 }
  0x3b   : > { %2963 = vmatmul.mubr.msk.bf16.gmra.mrb[20].mxu0 %vm580_vm2, %v3178_v8  ;;  %v2866_v8 = vld [vmem:[%s3429_s24 + $0x18] sm:$0xff]  }
  0x3c   : > { %2966 = vmatprep.mubr.msk.bf16.mxu0 %vm3225_vm1, %v3224_v1  ;;  %v2778_v17 = vunpack.c.l.bf16 %v2866_v8 }
  0x43   : > { %2967 = vmatmul.mubr.msk.bf16.gmra.mrb[24].mxu0 %vm580_vm2, %v3179_v9 }
  0x44   : > { %2970 = vmatprep.mubr.msk.bf16.mxu0 %vm3225_vm1, %v3224_v1 }
  0x4b   : > { %2971 = vmatmul.mubr.msk.bf16.gmra.mrb[28].mxu0 %vm580_vm2, %v3180_v10 }
  0x4c   : > { %2974 = vmatprep.mubr.msk.bf16.mxu0 %vm3225_vm1, %v3224_v1 }
  0x53   : > { %2975 = vmatmul.mubr.msk.bf16.gmra.mrb[32].mxu0 %vm580_vm2, %v3181_v11 }
  0x54   : > { %2978 = vmatprep.mubr.msk.bf16.mxu0 %vm3225_vm1, %v3224_v1 }
  0x5b   : > { %2979 = vmatmul.mubr.msk.bf16.gmra.mrb[36].mxu0 %vm580_vm2, %v3182_v12  ;;  %v1173_v12 = vmul.f32 %v2775_v63, %v2687_v59 }
  0x5c   : > { %2982 = vmatprep.mubr.msk.bf16.mxu0 %vm3225_vm1, %v3224_v1 }
  0x63   : > { %2983 = vmatmul.mubr.msk.bf16.gmra.mrb[40].mxu0 %vm580_vm2, %v3183_v13 }
  0x64   : > { %2986 = vmatprep.mubr.msk.bf16.mxu0 %vm3225_vm1, %v3224_v1 }
  0x6b   : > { %2987 = vmatmul.mubr.msk.bf16.gmra.mrb[44].mxu0 %vm580_vm2, %v3184_v15  ;;  %v1397_v15 = vadd.f32 %v2712_v7, %v1172_v5 }
  0x6c   : > { %2990 = vmatprep.mubr.msk.bf16.mxu0 %vm3225_vm1, %v3224_v1 }
  0x73   : > { %2991 = vmatmul.mubr.msk.bf16.gmra.mrb[48].mxu0 %vm580_vm2, %v3185_v19 }
  0x74   : > { %2994 = vmatprep.mubr.msk.bf16.mxu0 %vm3225_vm1, %v3224_v1 }
  0x7b   : > { %2995 = vmatmul.mubr.msk.bf16.gmra.mrb[52].mxu0 %vm580_vm2, %v3186_v20 }
  0x7c   : > { %2998 = vmatprep.mubr.msk.bf16.mxu0 %vm3225_vm1, %v3224_v1 }
  0x83   : > { %2999 = vmatmul.mubr.msk.bf16.gmra.mrb[56].mxu0 %vm580_vm2, %v3187_v21  ;;  %v1398_v21 = vadd.f32 %v2712_v7, %v1173_v12  ;;  %v2869_v7 = vld [vmem:[%s3429_s24 + $0x30] sm:$0xff]  }
  0x84   : > { %3002 = vmatprep.mubr.msk.bf16.mxu0 %vm3225_vm1, %v3224_v1 }
  0x8b   : > { %3003 = vmatmul.mubr.msk.bf16.gmra.mrb[60].mxu0 %vm580_vm2, %v3188_v22  ;;  %v2779_v22 = vunpack.c.h.bf16 %v2866_v8 }
  0x8c   : > { %3006 = vmatprep.mubr.msk.bf16.mxu0 %vm3225_vm1, %v3224_v1 }
  0x8d   : > { %v1175_v34 = vmul.f32 %v2779_v22, %v2688_v18 }
  0x93   : > { %3007 = vmatmul.mubr.msk.bf16.gmra.mrb[64].mxu0 %vm580_vm2, %v3189_v23 }
  0x94   : > { %3010 = vmatprep.mubr.msk.bf16.mxu0 %vm3225_vm1, %v3224_v1 }
  0x9b   : > { %3011 = vmatmul.mubr.msk.bf16.gmra.mrb[68].mxu0 %vm580_vm2, %v3190_v24 }
  0x9c   : > { %3014 = vmatprep.mubr.msk.bf16.mxu0 %vm3225_vm1, %v3224_v1 }
  0xa3   : > { %3015 = vmatmul.mubr.msk.bf16.gmra.mrb[72].mxu0 %vm580_vm2, %v3191_v25 }
  0xa4   : > { %3018 = vmatprep.mubr.msk.bf16.mxu0 %vm3225_vm1, %v3224_v1 }
  0xab   : > { %3019 = vmatmul.mubr.msk.bf16.gmra.mrb[76].mxu0 %vm580_vm2, %v3192_v26 }
  0xac   : > { %3022 = vmatprep.mubr.msk.bf16.mxu0 %vm3225_vm1, %v3224_v1 }
  0xb3   : > { %3023 = vmatmul.mubr.msk.bf16.gmra.mrb[80].mxu0 %vm580_vm2, %v3193_v27  ;;  %v1174_v27 = vmul.f32 %v2778_v17, %v2688_v18  ;;  %v2691_v17 = vld [vmem:[%s4070_s2 + $0x6] ss:$0 sm:$0xff] }
  0xb4   : > { %3026 = vmatprep.mubr.msk.bf16.mxu0 %vm3225_vm1, %v3224_v1 }
  0xbb   : > { %3027 = vmatmul.mubr.msk.bf16.gmra.mrb[84].mxu0 %vm580_vm2, %v3194_v28 }
  0xbc   : > { %3030 = vmatprep.mubr.msk.bf16.mxu0 %vm3225_vm1, %v3224_v1 }
  0xc3   : > { %3031 = vmatmul.mubr.msk.bf16.gmra.mrb[88].mxu0 %vm580_vm2, %v3195_v29  ;;  %v2713_v29 = vld [vmem:[%s4071_s3 + $0x3] ss:$0 sm:$0xff] }
  0xc4   : > { %3034 = vmatprep.mubr.msk.bf16.mxu0 %vm3225_vm1, %v3224_v1  ;;  %v1399_v36 = vadd.f32 %v2713_v29, %v1174_v27  ;;  %v1400_v41 = vadd.f32 %v2713_v29, %v1175_v34  ;;  %v2870_v29 = vld [vmem:[%s3429_s24 + $0x38] sm:$0xff]  }
  0xcb   : > { %3035 = vmatmul.mubr.msk.bf16.gmra.mrb[92].mxu0 %vm580_vm2, %v3196_v30  ;;  %v2867_v30 = vld [vmem:[%s3429_s24 + $0x20] sm:$0xff]  }
  0xcc   : > { %3038 = vmatprep.mubr.msk.bf16.mxu0 %vm3225_vm1, %v3224_v1  ;;  %v2782_v37 = vunpack.c.l.bf16 %v2867_v30  ;;  %v2783_v42 = vunpack.c.h.bf16 %v2867_v30 }
  0xd3   : > { %3039 = vmatmul.mubr.msk.bf16.gmra.mrb[96].mxu0 %vm580_vm2, %v3197_v31 }
  0xe6   : > { %v694_v45 = vpop.f32.mrb[0].mxu0 }
  0xe7   : > { %v1443_v46 = vadd.f32 %v1393_v40, %v694_v45  ;;  %2206 = vrot.lane.b32.xlu1 %v694_v45, %s3226_s17  ;;  %v2944_v47 = vpop.f32.mrb[1].mxu0 }
  0xe8   : > { %v697_v49 = vpop.f32.mrb[2].mxu0  ;;  %v1176_v47 = vmul.f32 %v2782_v37, %v2689_v38  ;;  %v2692_v37 = vld [vmem:[%s4070_s2 + $0x7] ss:$0 sm:$0xff] }
  0xe9   : > { %v1493_v52 = vmax.f32 %v1443_v46, 0.0  ;;  %v1444_v53 = vadd.f32 %v1394_v43, %v697_v49  ;;  %v2945_v54 = vpop.f32.mrb[3].mxu0 }
  0xea   : > { %v1177_v54 = vmul.f32 %v2783_v42, %v2689_v38 }
  0xeb   : > { %v1494_v56 = vmax.f32 %v1444_v53, 0.0  ;;  %2208 = vrot.lane.b32.xlu1 %v697_v49, %s3226_s17  ;;  %v1545_v60 = vmul.f32 %v3356_v14, %v1493_v52  ;;  %v2714_v49 = vld [vmem:[%s4071_s3 + $0x4] ss:$0 sm:$0xff] }
  0xed   : > { %v1546_v61 = vmul.f32 %v3364_v16, %v1494_v56  ;;  %v1401_v56 = vadd.f32 %v2714_v49, %v1176_v47 }
  0xee   : > { %v702_v0 = vpop.f32.mrb[4].mxu0 }
  0xef   : > { %v1595_v2 = vpack.c.bf16 %v1546_v61, %v1545_v60  ;;  %v1445_v3 = vadd.f32 %v1395_v57, %v702_v0  ;;  %2210 = vrot.lane.b32.xlu0 %v702_v0, %s3226_s17  ;;  %v2948_v4 = vpop.f32.mrb[5].mxu0  ;;  %v2786_v57 = vunpack.c.l.bf16 %v2868_v50  ;;  %v1402_v61 = vadd.f32 %v2714_v49, %v1177_v54  ;;  %v2871_v49 = vld [vmem:[%s3429_s24 + $0x40] sm:$0xff]  }
  0xf0   : > { %v705_v6 = vpop.f32.mrb[6].mxu0 }
  0xf1   : > { %v1495_v9 = vmax.f32 %v1445_v3, 0.0  ;;  %v1446_v10 = vadd.f32 %v1396_v62, %v705_v6  ;;  %2212 = vrot.lane.b32.xlu1 %v705_v6, %s3226_s17  ;;  %v2949_v11 = vpop.f32.mrb[7].mxu0  ;;  %3045 = vmatmul.mubr.msk.bf16.vlgmr.msra.gmra.mrb[0].mxu1 %vm1621_vm4, %v1595_v2  ;;  %v2787_v62 = vunpack.c.h.bf16 %v2868_v50  ;;  %v1178_v4 = vmul.f32 %v2786_v57, %v2690_v58  ;;  %v2715_v6 = vld [vmem:[%s4071_s3 + $0x5] ss:$0 sm:$0xff]  ;;  %v2693_v57 = vld [vmem:[%s4070_s2 + $0x8] ss:$0 sm:$0xff] }
  0xf2   : > { %3048 = vmatprep.mubr.msk.bf16.mxu1 %vm3225_vm1, %v3224_v1 }
  0xf3   : > { %v1496_v13 = vmax.f32 %v1446_v10, 0.0  ;;  %v1547_v19 = vmul.f32 %v3356_v14, %v1495_v9  ;;  %v1179_v11 = vmul.f32 %v2787_v62, %v2690_v58 }
  0xf5   : > { %v1548_v20 = vmul.f32 %v3364_v16, %v1496_v13  ;;  %v1403_v13 = vadd.f32 %v2715_v6, %v1178_v4 }
  0xf6   : > { %v710_v23 = vpop.f32.mrb[8].mxu0 }
  0xf7   : > { %v1596_v24 = vpack.c.bf16 %v1548_v20, %v1547_v19  ;;  %v1447_v25 = vadd.f32 %v1397_v15, %v710_v23  ;;  %2214 = vrot.lane.b32.xlu0 %v710_v23, %s3226_s17  ;;  %v2952_v26 = vpop.f32.mrb[9].mxu0  ;;  %v2790_v15 = vunpack.c.l.bf16 %v2869_v7  ;;  %v1404_v20 = vadd.f32 %v2715_v6, %v1179_v11  ;;  %v2872_v6 = vld [vmem:[%s3429_s24 + $0x48] sm:$0xff]  }
  0xf8   : > { %v713_v28 = vpop.f32.mrb[10].mxu0 }
  0xf9   : > { %v1497_v31 = vmax.f32 %v1447_v25, 0.0  ;;  %v1448_v32 = vadd.f32 %v1398_v21, %v713_v28  ;;  %2216 = vrot.lane.b32.xlu1 %v713_v28, %s3226_s17  ;;  %v2953_v33 = vpop.f32.mrb[11].mxu0  ;;  %3049 = vmatmul.mubr.msk.bf16.gmra.mrb[4].mxu1 %vm1621_vm4, %v1596_v24  ;;  %v2791_v21 = vunpack.c.h.bf16 %v2869_v7  ;;  %v1180_v26 = vmul.f32 %v2790_v15, %v2691_v17  ;;  %v2716_v28 = vld [vmem:[%s4071_s3 + $0x6] ss:$0 sm:$0xff]  ;;  %v2694_v15 = vld [vmem:[%s4070_s2 + $0x9] ss:$0 sm:$0xff] }
  0xfa   : > { %3052 = vmatprep.mubr.msk.bf16.mxu1 %vm3225_vm1, %v3224_v1 }
  0xfb   : > { %v1498_v35 = vmax.f32 %v1448_v32, 0.0  ;;  %v1549_v39 = vmul.f32 %v3356_v14, %v1497_v31  ;;  %v1181_v33 = vmul.f32 %v2791_v21, %v2691_v17 }
  0xfd   : > { %v1550_v40 = vmul.f32 %v3364_v16, %v1498_v35  ;;  %v1405_v35 = vadd.f32 %v2716_v28, %v1180_v26 }
  0xfe   : > { %v718_v43 = vpop.f32.mrb[12].mxu0 }
  0xff   : > { %v1597_v44 = vpack.c.bf16 %v1550_v40, %v1549_v39  ;;  %v1449_v45 = vadd.f32 %v1399_v36, %v718_v43  ;;  %2218 = vrot.lane.b32.xlu0 %v718_v43, %s3226_s17  ;;  %v2956_v46 = vpop.f32.mrb[13].mxu0  ;;  %v2794_v36 = vunpack.c.l.bf16 %v2870_v29  ;;  %v1406_v40 = vadd.f32 %v2716_v28, %v1181_v33  ;;  %v2873_v28 = vld [vmem:[%s3429_s24 + $0x50] sm:$0xff]  }
 0x100   : > { %v721_v48 = vpop.f32.mrb[14].mxu0 }
 0x101   : > { %v1499_v51 = vmax.f32 %v1449_v45, 0.0  ;;  %v1450_v52 = vadd.f32 %v1400_v41, %v721_v48  ;;  %2220 = vrot.lane.b32.xlu1 %v721_v48, %s3226_s17  ;;  %v2957_v53 = vpop.f32.mrb[15].mxu0  ;;  %3053 = vmatmul.mubr.msk.bf16.gmra.mrb[8].mxu1 %vm1621_vm4, %v1597_v44  ;;  %v2795_v41 = vunpack.c.h.bf16 %v2870_v29  ;;  %v1182_v46 = vmul.f32 %v2794_v36, %v2692_v37  ;;  %v2717_v48 = vld [vmem:[%s4071_s3 + $0x7] ss:$0 sm:$0xff]  ;;  %v2695_v36 = vld [vmem:[%s4070_s2 + $0xa] ss:$0 sm:$0xff] }
 0x102   : > { %3056 = vmatprep.mubr.msk.bf16.mxu1 %vm3225_vm1, %v3224_v1 }
 0x103   : > { %v1500_v55 = vmax.f32 %v1450_v52, 0.0  ;;  %v1551_v59 = vmul.f32 %v3356_v14, %v1499_v51  ;;  %v1183_v53 = vmul.f32 %v2795_v41, %v2692_v37 }
 0x105   : > { %v1552_v60 = vmul.f32 %v3364_v16, %v1500_v55  ;;  %v1407_v55 = vadd.f32 %v2717_v48, %v1182_v46 }
 0x106   : > { %v726_v63 = vpop.f32.mrb[16].mxu0 }
 0x107   : > { %v1598_v0 = vpack.c.bf16 %v1552_v60, %v1551_v59  ;;  %v1451_v2 = vadd.f32 %v1401_v56, %v726_v63  ;;  %2222 = vrot.lane.b32.xlu0 %v726_v63, %s3226_s17  ;;  %v2960_v3 = vpop.f32.mrb[17].mxu0  ;;  %v2798_v56 = vunpack.c.l.bf16 %v2871_v49  ;;  %v1408_v60 = vadd.f32 %v2717_v48, %v1183_v53  ;;  %v2874_v48 = vld [vmem:[%s3429_s24 + $0x58] sm:$0xff]  }
 0x108   : > { %v729_v5 = vpop.f32.mrb[18].mxu0 }
 0x109   : > { %v1501_v8 = vmax.f32 %v1451_v2, 0.0  ;;  %v1452_v9 = vadd.f32 %v1402_v61, %v729_v5  ;;  %2224 = vrot.lane.b32.xlu1 %v729_v5, %s3226_s17  ;;  %v2961_v10 = vpop.f32.mrb[19].mxu0  ;;  %3057 = vmatmul.mubr.msk.bf16.gmra.mrb[12].mxu1 %vm1621_vm4, %v1598_v0  ;;  %v2799_v61 = vunpack.c.h.bf16 %v2871_v49  ;;  %v1184_v3 = vmul.f32 %v2798_v56, %v2693_v57  ;;  %v2718_v5 = vld [vmem:[%s4071_s3 + $0x8] ss:$0 sm:$0xff]  ;;  %v2696_v56 = vld [vmem:[%s4070_s2 + $0xb] ss:$0 sm:$0xff] }
 0x10a   : > { %3060 = vmatprep.mubr.msk.bf16.mxu1 %vm3225_vm1, %v3224_v1 }
 0x10b   : > { %v1502_v12 = vmax.f32 %v1452_v9, 0.0  ;;  %v1553_v18 = vmul.f32 %v3356_v14, %v1501_v8  ;;  %v1185_v10 = vmul.f32 %v2799_v61, %v2693_v57 }
 0x10d   : > { %v1554_v19 = vmul.f32 %v3364_v16, %v1502_v12  ;;  %v1409_v12 = vadd.f32 %v2718_v5, %v1184_v3 }
 0x10e   : > { %v734_v22 = vpop.f32.mrb[20].mxu0 }
 0x10f   : > { %v1599_v23 = vpack.c.bf16 %v1554_v19, %v1553_v18  ;;  %v1453_v24 = vadd.f32 %v1403_v13, %v734_v22  ;;  %2226 = vrot.lane.b32.xlu0 %v734_v22, %s3226_s17  ;;  %v2964_v25 = vpop.f32.mrb[21].mxu0  ;;  %v2802_v13 = vunpack.c.l.bf16 %v2872_v6  ;;  %v1410_v19 = vadd.f32 %v2718_v5, %v1185_v10  ;;  %v2875_v5 = vld [vmem:[%s3429_s24 + $0x60] sm:$0xff]  }
 0x110   : > { %v737_v27 = vpop.f32.mrb[22].mxu0 }
 0x111   : > { %v1503_v30 = vmax.f32 %v1453_v24, 0.0  ;;  %v1454_v31 = vadd.f32 %v1404_v20, %v737_v27  ;;  %2228 = vrot.lane.b32.xlu1 %v737_v27, %s3226_s17  ;;  %v2965_v32 = vpop.f32.mrb[23].mxu0  ;;  %3061 = vmatmul.mubr.msk.bf16.gmra.mrb[16].mxu1 %vm1621_vm4, %v1599_v23  ;;  %v2803_v20 = vunpack.c.h.bf16 %v2872_v6  ;;  %v1186_v25 = vmul.f32 %v2802_v13, %v2694_v15  ;;  %v2719_v27 = vld [vmem:[%s4071_s3 + $0x9] ss:$0 sm:$0xff]  ;;  %v2697_v13 = vld [vmem:[%s4070_s2 + $0xc] ss:$0 sm:$0xff] }
 0x112   : > { %3064 = vmatprep.mubr.msk.bf16.mxu1 %vm3225_vm1, %v3224_v1 }
 0x113   : > { %v1504_v34 = vmax.f32 %v1454_v31, 0.0  ;;  %v1555_v38 = vmul.f32 %v3356_v14, %v1503_v30  ;;  %v1187_v32 = vmul.f32 %v2803_v20, %v2694_v15 }
 0x115   : > { %v1556_v39 = vmul.f32 %v3364_v16, %v1504_v34  ;;  %v1411_v34 = vadd.f32 %v2719_v27, %v1186_v25 }
 0x116   : > { %v742_v42 = vpop.f32.mrb[24].mxu0 }
 0x117   : > { %v1600_v43 = vpack.c.bf16 %v1556_v39, %v1555_v38  ;;  %v1455_v44 = vadd.f32 %v1405_v35, %v742_v42  ;;  %2230 = vrot.lane.b32.xlu0 %v742_v42, %s3226_s17  ;;  %v2968_v45 = vpop.f32.mrb[25].mxu0  ;;  %v2806_v35 = vunpack.c.l.bf16 %v2873_v28  ;;  %v1412_v39 = vadd.f32 %v2719_v27, %v1187_v32  ;;  %v2876_v27 = vld [vmem:[%s3429_s24 + $0x68] sm:$0xff]  }
 0x118   : > { %v745_v47 = vpop.f32.mrb[26].mxu0 }
 0x119   : > { %v1505_v50 = vmax.f32 %v1455_v44, 0.0  ;;  %v1456_v51 = vadd.f32 %v1406_v40, %v745_v47  ;;  %2232 = vrot.lane.b32.xlu1 %v745_v47, %s3226_s17  ;;  %v2969_v52 = vpop.f32.mrb[27].mxu0  ;;  %3065 = vmatmul.mubr.msk.bf16.gmra.mrb[20].mxu1 %vm1621_vm4, %v1600_v43  ;;  %v2807_v40 = vunpack.c.h.bf16 %v2873_v28  ;;  %v1188_v45 = vmul.f32 %v2806_v35, %v2695_v36  ;;  %v2720_v47 = vld [vmem:[%s4071_s3 + $0xa] ss:$0 sm:$0xff]  ;;  %v2698_v35 = vld [vmem:[%s4070_s2 + $0xd] ss:$0 sm:$0xff] }
 0x11a   : > { %3068 = vmatprep.mubr.msk.bf16.mxu1 %vm3225_vm1, %v3224_v1 }
 0x11b   : > { %v1506_v54 = vmax.f32 %v1456_v51, 0.0  ;;  %v1557_v58 = vmul.f32 %v3356_v14, %v1505_v50  ;;  %v1189_v52 = vmul.f32 %v2807_v40, %v2695_v36 }
 0x11d   : > { %v1558_v59 = vmul.f32 %v3364_v16, %v1506_v54  ;;  %v1413_v54 = vadd.f32 %v2720_v47, %v1188_v45 }
 0x11e   : > { %v750_v62 = vpop.f32.mrb[28].mxu0 }
 0x11f   : > { %v1601_v63 = vpack.c.bf16 %v1558_v59, %v1557_v58  ;;  %v1457_v0 = vadd.f32 %v1407_v55, %v750_v62  ;;  %2234 = vrot.lane.b32.xlu0 %v750_v62, %s3226_s17  ;;  %v2972_v2 = vpop.f32.mrb[29].mxu0  ;;  %v2810_v55 = vunpack.c.l.bf16 %v2874_v48  ;;  %v1414_v59 = vadd.f32 %v2720_v47, %v1189_v52  ;;  %v2877_v47 = vld [vmem:[%s3429_s24 + $0x70] sm:$0xff]  }
 0x120   : > { %v753_v4 = vpop.f32.mrb[30].mxu0 }
 0x121   : > { %v1507_v7 = vmax.f32 %v1457_v0, 0.0  ;;  %v1458_v8 = vadd.f32 %v1408_v60, %v753_v4  ;;  %2236 = vrot.lane.b32.xlu1 %v753_v4, %s3226_s17  ;;  %v2973_v9 = vpop.f32.mrb[31].mxu0  ;;  %3069 = vmatmul.mubr.msk.bf16.gmra.mrb[24].mxu1 %vm1621_vm4, %v1601_v63  ;;  %v2811_v60 = vunpack.c.h.bf16 %v2874_v48  ;;  %v1190_v2 = vmul.f32 %v2810_v55, %v2696_v56  ;;  %v2721_v4 = vld [vmem:[%s4071_s3 + $0xb] ss:$0 sm:$0xff]  ;;  %v2699_v55 = vld [vmem:[%s4070_s2 + $0xe] ss:$0 sm:$0xff] }
 0x122   : > { %3072 = vmatprep.mubr.msk.bf16.mxu1 %vm3225_vm1, %v3224_v1 }
 0x123   : > { %v1508_v11 = vmax.f32 %v1458_v8, 0.0  ;;  %v1559_v17 = vmul.f32 %v3356_v14, %v1507_v7  ;;  %v1191_v9 = vmul.f32 %v2811_v60, %v2696_v56 }
 0x125   : > { %v1560_v18 = vmul.f32 %v3364_v16, %v1508_v11  ;;  %v1415_v11 = vadd.f32 %v2721_v4, %v1190_v2 }
 0x126   : > { %v758_v21 = vpop.f32.mrb[32].mxu0 }
 0x127   : > { %v1602_v22 = vpack.c.bf16 %v1560_v18, %v1559_v17  ;;  %v1459_v23 = vadd.f32 %v1409_v12, %v758_v21  ;;  %2238 = vrot.lane.b32.xlu0 %v758_v21, %s3226_s17  ;;  %v2976_v24 = vpop.f32.mrb[33].mxu0  ;;  %v2814_v12 = vunpack.c.l.bf16 %v2875_v5  ;;  %v1416_v18 = vadd.f32 %v2721_v4, %v1191_v9  ;;  %v2878_v4 = vld [vmem:[%s3429_s24 + $0x78] sm:$0xff]  }
 0x128   : > { %v761_v26 = vpop.f32.mrb[34].mxu0 }
 0x129   : > { %v1509_v29 = vmax.f32 %v1459_v23, 0.0  ;;  %v1460_v30 = vadd.f32 %v1410_v19, %v761_v26  ;;  %2240 = vrot.lane.b32.xlu1 %v761_v26, %s3226_s17  ;;  %v2977_v31 = vpop.f32.mrb[35].mxu0  ;;  %3073 = vmatmul.mubr.msk.bf16.gmra.mrb[28].mxu1 %vm1621_vm4, %v1602_v22  ;;  %v2815_v19 = vunpack.c.h.bf16 %v2875_v5  ;;  %v1192_v24 = vmul.f32 %v2814_v12, %v2697_v13  ;;  %v2722_v26 = vld [vmem:[%s4071_s3 + $0xc] ss:$0 sm:$0xff]  ;;  %v2700_v12 = vld [vmem:[%s4070_s2 + $0xf] ss:$0 sm:$0xff] }
 0x12a   : > { %3076 = vmatprep.mubr.msk.bf16.mxu1 %vm3225_vm1, %v3224_v1 }
 0x12b   : > { %v1510_v33 = vmax.f32 %v1460_v30, 0.0  ;;  %v1561_v37 = vmul.f32 %v3356_v14, %v1509_v29  ;;  %v1193_v31 = vmul.f32 %v2815_v19, %v2697_v13 }
 0x12d   : > { %v1562_v38 = vmul.f32 %v3364_v16, %v1510_v33  ;;  %v1417_v33 = vadd.f32 %v2722_v26, %v1192_v24 }
 0x12e   : > { %v766_v41 = vpop.f32.mrb[36].mxu0 }
 0x12f   : > { %v1603_v42 = vpack.c.bf16 %v1562_v38, %v1561_v37  ;;  %v1461_v43 = vadd.f32 %v1411_v34, %v766_v41  ;;  %2242 = vrot.lane.b32.xlu0 %v766_v41, %s3226_s17  ;;  %v2980_v44 = vpop.f32.mrb[37].mxu0  ;;  %v2818_v34 = vunpack.c.l.bf16 %v2876_v27  ;;  %v1418_v38 = vadd.f32 %v2722_v26, %v1193_v31  ;;  %v2879_v26 = vld [vmem:[%s3429_s24 + $0x80] sm:$0xff]  }
 0x130   : > { %v769_v46 = vpop.f32.mrb[38].mxu0 }
 0x131   : > { %v1511_v49 = vmax.f32 %v1461_v43, 0.0  ;;  %v1462_v50 = vadd.f32 %v1412_v39, %v769_v46  ;;  %2244 = vrot.lane.b32.xlu1 %v769_v46, %s3226_s17  ;;  %v2981_v51 = vpop.f32.mrb[39].mxu0  ;;  %3077 = vmatmul.mubr.msk.bf16.gmra.mrb[32].mxu1 %vm1621_vm4, %v1603_v42  ;;  %v2819_v39 = vunpack.c.h.bf16 %v2876_v27  ;;  %v1194_v44 = vmul.f32 %v2818_v34, %v2698_v35  ;;  %v2723_v46 = vld [vmem:[%s4071_s3 + $0xd] ss:$0 sm:$0xff]  ;;  %v2701_v34 = vld [vmem:[%s4070_s2 + $0x10] ss:$0 sm:$0xff] }
 0x132   : > { %3080 = vmatprep.mubr.msk.bf16.mxu1 %vm3225_vm1, %v3224_v1 }
 0x133   : > { %v1512_v53 = vmax.f32 %v1462_v50, 0.0  ;;  %v1563_v57 = vmul.f32 %v3356_v14, %v1511_v49  ;;  %v1195_v51 = vmul.f32 %v2819_v39, %v2698_v35 }
 0x135   : > { %v1564_v58 = vmul.f32 %v3364_v16, %v1512_v53  ;;  %v1419_v53 = vadd.f32 %v2723_v46, %v1194_v44 }
 0x136   : > { %v774_v61 = vpop.f32.mrb[40].mxu0 }
 0x137   : > { %v1604_v62 = vpack.c.bf16 %v1564_v58, %v1563_v57  ;;  %v1463_v63 = vadd.f32 %v1413_v54, %v774_v61  ;;  %2246 = vrot.lane.b32.xlu0 %v774_v61, %s3226_s17  ;;  %v2984_v0 = vpop.f32.mrb[41].mxu0  ;;  %v2822_v54 = vunpack.c.l.bf16 %v2877_v47  ;;  %v1420_v58 = vadd.f32 %v2723_v46, %v1195_v51  ;;  %v2880_v46 = vld [vmem:[%s3429_s24 + $0x88] sm:$0xff]  }
 0x138   : > { %v777_v3 = vpop.f32.mrb[42].mxu0 }
 0x139   : > { %v1513_v6 = vmax.f32 %v1463_v63, 0.0  ;;  %v1464_v7 = vadd.f32 %v1414_v59, %v777_v3  ;;  %2248 = vrot.lane.b32.xlu1 %v777_v3, %s3226_s17  ;;  %v2985_v8 = vpop.f32.mrb[43].mxu0  ;;  %3081 = vmatmul.mubr.msk.bf16.gmra.mrb[36].mxu1 %vm1621_vm4, %v1604_v62  ;;  %v2823_v59 = vunpack.c.h.bf16 %v2877_v47  ;;  %v1196_v0 = vmul.f32 %v2822_v54, %v2699_v55  ;;  %v2724_v3 = vld [vmem:[%s4071_s3 + $0xe] ss:$0 sm:$0xff]  ;;  %v2702_v54 = vld [vmem:[%s4070_s2 + $0x11] ss:$0 sm:$0xff] }
 0x13a   : > { %3084 = vmatprep.mubr.msk.bf16.mxu1 %vm3225_vm1, %v3224_v1 }
 0x13b   : > { %v1514_v10 = vmax.f32 %v1464_v7, 0.0  ;;  %v1565_v15 = vmul.f32 %v3356_v14, %v1513_v6  ;;  %v1197_v8 = vmul.f32 %v2823_v59, %v2699_v55 }
 0x13d   : > { %v1566_v17 = vmul.f32 %v3364_v16, %v1514_v10  ;;  %v1421_v10 = vadd.f32 %v2724_v3, %v1196_v0 }
 0x13e   : > { %v782_v20 = vpop.f32.mrb[44].mxu0 }
 0x13f   : > { %v1605_v21 = vpack.c.bf16 %v1566_v17, %v1565_v15  ;;  %v1465_v22 = vadd.f32 %v1415_v11, %v782_v20  ;;  %2250 = vrot.lane.b32.xlu0 %v782_v20, %s3226_s17  ;;  %v2988_v23 = vpop.f32.mrb[45].mxu0  ;;  %v2826_v11 = vunpack.c.l.bf16 %v2878_v4  ;;  %v1422_v17 = vadd.f32 %v2724_v3, %v1197_v8  ;;  %v2881_v3 = vld [vmem:[%s3429_s24 + $0x90] sm:$0xff]  }
 0x140   : > { %v785_v25 = vpop.f32.mrb[46].mxu0 }
 0x141   : > { %v1515_v28 = vmax.f32 %v1465_v22, 0.0  ;;  %v1466_v29 = vadd.f32 %v1416_v18, %v785_v25  ;;  %2252 = vrot.lane.b32.xlu1 %v785_v25, %s3226_s17  ;;  %v2989_v30 = vpop.f32.mrb[47].mxu0  ;;  %3085 = vmatmul.mubr.msk.bf16.gmra.mrb[40].mxu1 %vm1621_vm4, %v1605_v21  ;;  %v2827_v18 = vunpack.c.h.bf16 %v2878_v4  ;;  %v1198_v23 = vmul.f32 %v2826_v11, %v2700_v12  ;;  %v2725_v25 = vld [vmem:[%s4071_s3 + $0xf] ss:$0 sm:$0xff]  ;;  %v2703_v11 = vld [vmem:[%s4070_s2 + $0x12] ss:$0 sm:$0xff] }
 0x142   : > { %3088 = vmatprep.mubr.msk.bf16.mxu1 %vm3225_vm1, %v3224_v1 }
 0x143   : > { %v1516_v32 = vmax.f32 %v1466_v29, 0.0  ;;  %v1567_v36 = vmul.f32 %v3356_v14, %v1515_v28  ;;  %v1199_v30 = vmul.f32 %v2827_v18, %v2700_v12 }
 0x145   : > { %v1568_v37 = vmul.f32 %v3364_v16, %v1516_v32  ;;  %v1423_v32 = vadd.f32 %v2725_v25, %v1198_v23 }
 0x146   : > { %v790_v40 = vpop.f32.mrb[48].mxu0 }
 0x147   : > { %v1606_v41 = vpack.c.bf16 %v1568_v37, %v1567_v36  ;;  %v1467_v42 = vadd.f32 %v1417_v33, %v790_v40  ;;  %2254 = vrot.lane.b32.xlu0 %v790_v40, %s3226_s17  ;;  %v2992_v43 = vpop.f32.mrb[49].mxu0  ;;  %v2830_v33 = vunpack.c.l.bf16 %v2879_v26  ;;  %v1424_v37 = vadd.f32 %v2725_v25, %v1199_v30  ;;  %v2882_v25 = vld [vmem:[%s3429_s24 + $0x98] sm:$0xff]  }
 0x148   : > { %v793_v45 = vpop.f32.mrb[50].mxu0 }
 0x149   : > { %v1517_v48 = vmax.f32 %v1467_v42, 0.0  ;;  %v1468_v49 = vadd.f32 %v1418_v38, %v793_v45  ;;  %2256 = vrot.lane.b32.xlu1 %v793_v45, %s3226_s17  ;;  %v2993_v50 = vpop.f32.mrb[51].mxu0  ;;  %3089 = vmatmul.mubr.msk.bf16.gmra.mrb[44].mxu1 %vm1621_vm4, %v1606_v41  ;;  %v2831_v38 = vunpack.c.h.bf16 %v2879_v26  ;;  %v1200_v43 = vmul.f32 %v2830_v33, %v2701_v34  ;;  %v2726_v45 = vld [vmem:[%s4071_s3 + $0x10] ss:$0 sm:$0xff]  ;;  %v2704_v33 = vld [vmem:[%s4070_s2 + $0x13] ss:$0 sm:$0xff] }
 0x14a   : > { %3092 = vmatprep.mubr.msk.bf16.mxu1 %vm3225_vm1, %v3224_v1 }
 0x14b   : > { %v1518_v52 = vmax.f32 %v1468_v49, 0.0  ;;  %v1569_v56 = vmul.f32 %v3356_v14, %v1517_v48  ;;  %v1201_v50 = vmul.f32 %v2831_v38, %v2701_v34 }
 0x14d   : > { %v1570_v57 = vmul.f32 %v3364_v16, %v1518_v52  ;;  %v1425_v52 = vadd.f32 %v2726_v45, %v1200_v43 }
 0x14e   : > { %v798_v60 = vpop.f32.mrb[52].mxu0 }
 0x14f   : > { %v1607_v61 = vpack.c.bf16 %v1570_v57, %v1569_v56  ;;  %v1469_v62 = vadd.f32 %v1419_v53, %v798_v60  ;;  %2258 = vrot.lane.b32.xlu0 %v798_v60, %s3226_s17  ;;  %v2996_v63 = vpop.f32.mrb[53].mxu0  ;;  %v2834_v53 = vunpack.c.l.bf16 %v2880_v46  ;;  %v1426_v57 = vadd.f32 %v2726_v45, %v1201_v50  ;;  %v2883_v45 = vld [vmem:[%s3429_s24 + $0xa0] sm:$0xff]  }
 0x150   : > { %v801_v2 = vpop.f32.mrb[54].mxu0 }
 0x151   : > { %v1519_v5 = vmax.f32 %v1469_v62, 0.0  ;;  %v1470_v6 = vadd.f32 %v1420_v58, %v801_v2  ;;  %2260 = vrot.lane.b32.xlu1 %v801_v2, %s3226_s17  ;;  %v2997_v7 = vpop.f32.mrb[55].mxu0  ;;  %3093 = vmatmul.mubr.msk.bf16.gmra.mrb[48].mxu1 %vm1621_vm4, %v1607_v61  ;;  %v2835_v58 = vunpack.c.h.bf16 %v2880_v46  ;;  %v1202_v63 = vmul.f32 %v2834_v53, %v2702_v54  ;;  %v2727_v2 = vld [vmem:[%s4071_s3 + $0x11] ss:$0 sm:$0xff]  ;;  %v3706_v53 = vld [vmem:[%s4072_s4] sm:$0xff] }
 0x152   : > { %3096 = vmatprep.mubr.msk.bf16.mxu1 %vm3225_vm1, %v3224_v1 }
 0x153   : > { %v1520_v9 = vmax.f32 %v1470_v6, 0.0  ;;  %v1571_v13 = vmul.f32 %v3356_v14, %v1519_v5  ;;  %v1203_v7 = vmul.f32 %v2835_v58, %v2702_v54 }
 0x155   : > { %v1572_v15 = vmul.f32 %v3364_v16, %v1520_v9  ;;  %v1427_v9 = vadd.f32 %v2727_v2, %v1202_v63 }
 0x156   : > { %v806_v19 = vpop.f32.mrb[56].mxu0 }
 0x157   : > { %v1608_v20 = vpack.c.bf16 %v1572_v15, %v1571_v13  ;;  %v1471_v21 = vadd.f32 %v1421_v10, %v806_v19  ;;  %2262 = vrot.lane.b32.xlu0 %v806_v19, %s3226_s17  ;;  %v3000_v22 = vpop.f32.mrb[57].mxu0  ;;  %v2838_v10 = vunpack.c.l.bf16 %v2881_v3  ;;  %v1428_v15 = vadd.f32 %v2727_v2, %v1203_v7  ;;  %v2884_v2 = vld [vmem:[%s3429_s24 + $0xa8] sm:$0xff]  }
 0x158   : > { %v809_v24 = vpop.f32.mrb[58].mxu0 }
 0x159   : > { %v1521_v27 = vmax.f32 %v1471_v21, 0.0  ;;  %v1472_v28 = vadd.f32 %v1422_v17, %v809_v24  ;;  %2264 = vrot.lane.b32.xlu1 %v809_v24, %s3226_s17  ;;  %v3001_v29 = vpop.f32.mrb[59].mxu0  ;;  %3097 = vmatmul.mubr.msk.bf16.gmra.mrb[52].mxu1 %vm1621_vm4, %v1608_v20  ;;  %v2839_v17 = vunpack.c.h.bf16 %v2881_v3  ;;  %v1204_v22 = vmul.f32 %v2838_v10, %v2703_v11  ;;  %v2728_v24 = vld [vmem:[%s4071_s3 + $0x12] ss:$0 sm:$0xff] }
 0x15a   : > { %3100 = vmatprep.mubr.msk.bf16.mxu1 %vm3225_vm1, %v3224_v1 }
 0x15b   : > { %v1522_v31 = vmax.f32 %v1472_v28, 0.0  ;;  %v1573_v35 = vmul.f32 %v3356_v14, %v1521_v27  ;;  %v1205_v29 = vmul.f32 %v2839_v17, %v2703_v11  ;;  %v3726_v11 = vld [vmem:[%s4072_s4 + $0x8] sm:$0xff] }
 0x15d   : > { %v1574_v36 = vmul.f32 %v3364_v16, %v1522_v31  ;;  %v1429_v31 = vadd.f32 %v2728_v24, %v1204_v22 }
 0x15e   : > { %v814_v39 = vpop.f32.mrb[60].mxu0 }
 0x15f   : > { %v1609_v40 = vpack.c.bf16 %v1574_v36, %v1573_v35  ;;  %v1473_v41 = vadd.f32 %v1423_v32, %v814_v39  ;;  %2266 = vrot.lane.b32.xlu0 %v814_v39, %s3226_s17  ;;  %v3004_v42 = vpop.f32.mrb[61].mxu0  ;;  %v2842_v32 = vunpack.c.l.bf16 %v2882_v25  ;;  %v1430_v36 = vadd.f32 %v2728_v24, %v1205_v29  ;;  %v2885_v24 = vld [vmem:[%s3429_s24 + $0xb0] sm:$0xff]  }
 0x160   : > { %v817_v44 = vpop.f32.mrb[62].mxu0 }
 0x161   : > { %v1523_v47 = vmax.f32 %v1473_v41, 0.0  ;;  %v1474_v48 = vadd.f32 %v1424_v37, %v817_v44  ;;  %2268 = vrot.lane.b32.xlu1 %v817_v44, %s3226_s17  ;;  %v3005_v49 = vpop.f32.mrb[63].mxu0  ;;  %3101 = vmatmul.mubr.msk.bf16.gmra.mrb[56].mxu1 %vm1621_vm4, %v1609_v40  ;;  %v2843_v37 = vunpack.c.h.bf16 %v2882_v25  ;;  %v1206_v42 = vmul.f32 %v2842_v32, %v2704_v33  ;;  %v2729_v44 = vld [vmem:[%s4071_s3 + $0x13] ss:$0 sm:$0xff]  ;;  %v2707_v32 = vld [vmem:[%s4070_s2 + $0x16] ss:$0 sm:$0xff] }
 0x162   : > { %3104 = vmatprep.mubr.msk.bf16.mxu1 %vm3225_vm1, %v3224_v1 }
 0x163   : > { %v1524_v51 = vmax.f32 %v1474_v48, 0.0  ;;  %v1575_v55 = vmul.f32 %v3356_v14, %v1523_v47  ;;  %v1207_v48 = vmul.f32 %v2843_v37, %v2704_v33  ;;  %v1431_v50 = vadd.f32 %v2729_v44, %v1206_v42 }
 0x165   : > { %v1576_v56 = vmul.f32 %v3364_v16, %v1524_v51  ;;  %v2846_v51 = vunpack.c.l.bf16 %v2883_v45 }
 0x166   : > { %v822_v59 = vpop.f32.mrb[64].mxu0 }
 0x167   : > { %v1610_v60 = vpack.c.bf16 %v1576_v56, %v1575_v55  ;;  %v1475_v61 = vadd.f32 %v1425_v52, %v822_v59  ;;  %2270 = vrot.lane.b32.xlu0 %v822_v59, %s3226_s17  ;;  %v3008_v62 = vpop.f32.mrb[65].mxu0  ;;  %v2705_v52 = vld [vmem:[%s4070_s2 + $0x14] ss:$0 sm:$0xff]  ;;  %v1432_v56 = vadd.f32 %v2729_v44, %v1207_v48  ;;  %v2886_v44 = vld [vmem:[%s3429_s24 + $0xb8] sm:$0xff]  }
 0x168   : > { %v825_v0 = vpop.f32.mrb[66].mxu0  ;;  %v1208_v62 = vmul.f32 %v2846_v51, %v2705_v52  ;;  %v2708_v51 = vld [vmem:[%s4070_s2 + $0x17] ss:$0 sm:$0xff] }
 0x169   : > { %v1525_v4 = vmax.f32 %v1475_v61, 0.0  ;;  %v1476_v5 = vadd.f32 %v1426_v57, %v825_v0  ;;  %2272 = vrot.lane.b32.xlu1 %v825_v0, %s3226_s17  ;;  %v3009_v6 = vpop.f32.mrb[67].mxu0  ;;  %3105 = vmatmul.mubr.msk.bf16.gmra.mrb[60].mxu1 %vm1621_vm4, %v1610_v60  ;;  %v2847_v57 = vunpack.c.h.bf16 %v2883_v45  ;;  %v2730_v0 = vld [vmem:[%s4071_s3 + $0x14] ss:$0 sm:$0xff] }
 0x16a   : > { %3108 = vmatprep.mubr.msk.bf16.mxu1 %vm3225_vm1, %v3224_v1  ;;  %v1433_v7 = vadd.f32 %v2730_v0, %v1208_v62 }
 0x16b   : > { %v1526_v8 = vmax.f32 %v1476_v5, 0.0  ;;  %v1577_v12 = vmul.f32 %v3356_v14, %v1525_v4  ;;  %v1209_v5 = vmul.f32 %v2847_v57, %v2705_v52 }
 0x16d   : > { %v1578_v13 = vmul.f32 %v3364_v16, %v1526_v8  ;;  %v2850_v8 = vunpack.c.l.bf16 %v2884_v2 }
 0x16e   : > { %v830_v18 = vpop.f32.mrb[68].mxu0 }
 0x16f   : > { %v1611_v19 = vpack.c.bf16 %v1578_v13, %v1577_v12  ;;  %v1477_v20 = vadd.f32 %v1427_v9, %v830_v18  ;;  %2274 = vrot.lane.b32.xlu0 %v830_v18, %s3226_s17  ;;  %v3012_v21 = vpop.f32.mrb[69].mxu0  ;;  %v2706_v9 = vld [vmem:[%s4070_s2 + $0x15] ss:$0 sm:$0xff]  ;;  %v1434_v13 = vadd.f32 %v2730_v0, %v1209_v5  ;;  %v2887_v0 = vld [vmem:[%s3429_s24 + $0xc0] sm:$0xff]  }
 0x170   : > { %v833_v23 = vpop.f32.mrb[70].mxu0  ;;  %v1210_v21 = vmul.f32 %v2850_v8, %v2706_v9  ;;  %v2709_v8 = vld [vmem:[%s4070_s2 + $0x18] ss:$0 sm:$0xff] }
 0x171   : > { %v1527_v26 = vmax.f32 %v1477_v20, 0.0  ;;  %v1478_v27 = vadd.f32 %v1428_v15, %v833_v23  ;;  %2276 = vrot.lane.b32.xlu1 %v833_v23, %s3226_s17  ;;  %v3013_v28 = vpop.f32.mrb[71].mxu0  ;;  %3109 = vmatmul.mubr.msk.bf16.gmra.mrb[64].mxu1 %vm1621_vm4, %v1611_v19  ;;  %v2851_v15 = vunpack.c.h.bf16 %v2884_v2  ;;  %v2731_v23 = vld [vmem:[%s4071_s3 + $0x15] ss:$0 sm:$0xff] }
 0x172   : > { %3112 = vmatprep.mubr.msk.bf16.mxu1 %vm3225_vm1, %v3224_v1 }
 0x173   : > { %v1528_v30 = vmax.f32 %v1478_v27, 0.0  ;;  %v1579_v34 = vmul.f32 %v3356_v14, %v1527_v26  ;;  %v1211_v28 = vmul.f32 %v2851_v15, %v2706_v9 }
 0x175   : > { %v1580_v35 = vmul.f32 %v3364_v16, %v1528_v30  ;;  %v1435_v30 = vadd.f32 %v2731_v23, %v1210_v21 }
 0x176   : > { %v838_v38 = vpop.f32.mrb[72].mxu0 }
 0x177   : > { %v1612_v39 = vpack.c.bf16 %v1580_v35, %v1579_v34  ;;  %v1479_v40 = vadd.f32 %v1429_v31, %v838_v38  ;;  %2278 = vrot.lane.b32.xlu0 %v838_v38, %s3226_s17  ;;  %v3016_v41 = vpop.f32.mrb[73].mxu0  ;;  %v2854_v31 = vunpack.c.l.bf16 %v2885_v24  ;;  %v1436_v35 = vadd.f32 %v2731_v23, %v1211_v28 }
 0x178   : > { %v841_v43 = vpop.f32.mrb[74].mxu0 }
 0x179   : > { %v1529_v46 = vmax.f32 %v1479_v40, 0.0  ;;  %v1480_v47 = vadd.f32 %v1430_v36, %v841_v43  ;;  %2280 = vrot.lane.b32.xlu1 %v841_v43, %s3226_s17  ;;  %v3017_v14 = vpop.f32.mrb[75].mxu0  ;;  %3113 = vmatmul.mubr.msk.bf16.gmra.mrb[68].mxu1 %vm1621_vm4, %v1612_v39  ;;  %v2855_v36 = vunpack.c.h.bf16 %v2885_v24  ;;  %v1212_v41 = vmul.f32 %v2854_v31, %v2707_v32  ;;  %v2732_v43 = vld [vmem:[%s4071_s3 + $0x16] ss:$0 sm:$0xff] }
 0x17a   : > { %3116 = vmatprep.mubr.msk.bf16.mxu1 %vm3225_vm1, %v3224_v1 }
 0x17b   : > { %v1530_v49 = vmax.f32 %v1480_v47, 0.0  ;;  %v1581_v54 = vmul.f32 %v3706_v53, %v1529_v46  ;;  %v1213_v14 = vmul.f32 %v2855_v36, %v2707_v32 }
 0x17d   : > { %v1582_v55 = vmul.f32 %v3364_v16, %v1530_v49  ;;  %v1437_v49 = vadd.f32 %v2732_v43, %v1212_v41 }
 0x17e   : > { %v846_v58 = vpop.f32.mrb[76].mxu0 }
 0x17f   : > { %v1613_v59 = vpack.c.bf16 %v1582_v55, %v1581_v54  ;;  %v1481_v60 = vadd.f32 %v1431_v50, %v846_v58  ;;  %2282 = vrot.lane.b32.xlu0 %v846_v58, %s3226_s17  ;;  %v3020_v61 = vpop.f32.mrb[77].mxu0  ;;  %v2858_v50 = vunpack.c.l.bf16 %v2886_v44  ;;  %v1438_v55 = vadd.f32 %v2732_v43, %v1213_v14 }
 0x180   : > { %v849_v63 = vpop.f32.mrb[78].mxu0 }
 0x181   : > { %v1531_v3 = vmax.f32 %v1481_v60, 0.0  ;;  %v1482_v4 = vadd.f32 %v1432_v56, %v849_v63  ;;  %2284 = vrot.lane.b32.xlu1 %v849_v63, %s3226_s17  ;;  %v3021_v16 = vpop.f32.mrb[79].mxu0  ;;  %3117 = vmatmul.mubr.msk.bf16.gmra.mrb[72].mxu1 %vm1621_vm4, %v1613_v59  ;;  %v2859_v56 = vunpack.c.h.bf16 %v2886_v44  ;;  %v1214_v61 = vmul.f32 %v2858_v50, %v2708_v51  ;;  %v2733_v63 = vld [vmem:[%s4071_s3 + $0x17] ss:$0 sm:$0xff]  ;;  %v3789_v44 = vpop.permute.xlu0 %1936 }
 0x182   : > { %3120 = vmatprep.mubr.msk.bf16.mxu1 %vm3225_vm1, %v3224_v1  ;;  %v2207_v50 = vpop.permute.xlu1 %2206 }
 0x183   : > { %v1532_v6 = vmax.f32 %v1482_v4, 0.0  ;;  %v1583_v10 = vmul.f32 %v3706_v53, %v1531_v3  ;;  %v1215_v16 = vmul.f32 %v2859_v56, %v2708_v51  ;;  %v3803_v51 = vld [vmem:[%s4075_s7 + $0x1] ss:$0 sm:$0xff] }
 0x185   : > { %v1584_v12 = vmul.f32 %v3726_v11, %v1532_v6  ;;  %v1439_v6 = vadd.f32 %v2733_v63, %v1214_v61  ;;  %v3792_v14 = vpop.permute.xlu0 %1938 }
 0x186   : > { %v854_v17 = vpop.f32.mrb[80].mxu0 }
 0x187   : > { %v1614_v18 = vpack.c.bf16 %v1584_v12, %v1583_v10  ;;  %v1483_v19 = vadd.f32 %v1433_v7, %v854_v17  ;;  %2286 = vrot.lane.b32.xlu0 %v854_v17, %s3226_s17  ;;  %v3024_v20 = vpop.f32.mrb[81].mxu0  ;;  %v2862_v7 = vunpack.c.l.bf16 %v2887_v0  ;;  %v1440_v12 = vadd.f32 %v2733_v63, %v1215_v16 }
 0x188   : > { %v857_v22 = vpop.f32.mrb[82].mxu0 }
 0x189   : > { %v1533_v25 = vmax.f32 %v1483_v19, 0.0  ;;  %v1484_v26 = vadd.f32 %v1434_v13, %v857_v22  ;;  %2288 = vrot.lane.b32.xlu1 %v857_v22, %s3226_s17  ;;  %v3025_v27 = vpop.f32.mrb[83].mxu0  ;;  %3121 = vmatmul.mubr.msk.bf16.gmra.mrb[76].mxu1 %vm1621_vm4, %v1614_v18  ;;  %v2863_v13 = vunpack.c.h.bf16 %v2887_v0  ;;  %v1216_v20 = vmul.f32 %v2862_v7, %v2709_v8  ;;  %v2734_v22 = vld [vmem:[%s4071_s3 + $0x18] ss:$0 sm:$0xff] }
 0x18a   : > { %3124 = vmatprep.mubr.msk.bf16.mxu1 %vm3225_vm1, %v3224_v1 }
 0x18b   : > { %v1534_v29 = vmax.f32 %v1484_v26, 0.0  ;;  %v1585_v33 = vmul.f32 %v3706_v53, %v1533_v25  ;;  %v1217_v26 = vmul.f32 %v2863_v13, %v2709_v8  ;;  %v1441_v28 = vadd.f32 %v2734_v22, %v1216_v20 }
 0x18d   : > { %v1586_v34 = vmul.f32 %v3726_v11, %v1534_v29  ;;  %v1442_v31 = vadd.f32 %v2734_v22, %v1217_v26 }
 0x18e   : > { %v862_v37 = vpop.f32.mrb[84].mxu0 }
 0x18f   : > { %v1615_v38 = vpack.c.bf16 %v1586_v34, %v1585_v33  ;;  %v1485_v39 = vadd.f32 %v1435_v30, %v862_v37  ;;  %2290 = vrot.lane.b32.xlu0 %v862_v37, %s3226_s17  ;;  %v3028_v40 = vpop.f32.mrb[85].mxu0 }
 0x190   : > { %v865_v42 = vpop.f32.mrb[86].mxu0 }
 0x191   : > { %v1535_v45 = vmax.f32 %v1485_v39, 0.0  ;;  %v1486_v46 = vadd.f32 %v1436_v35, %v865_v42  ;;  %2292 = vrot.lane.b32.xlu1 %v865_v42, %s3226_s17  ;;  %v3029_v47 = vpop.f32.mrb[87].mxu0  ;;  %3125 = vmatmul.mubr.msk.bf16.gmra.mrb[80].mxu1 %vm1621_vm4, %v1615_v38 }
 0x192   : > { %3128 = vmatprep.mubr.msk.bf16.mxu1 %vm3225_vm1, %v3224_v1 }
 0x193   : > { %v1536_v48 = vmax.f32 %v1486_v46, 0.0  ;;  %v1587_v52 = vmul.f32 %v3706_v53, %v1535_v45 }
 0x195   : > { %v1588_v54 = vmul.f32 %v3726_v11, %v1536_v48 }
 0x196   : > { %v870_v57 = vpop.f32.mrb[88].mxu0 }
 0x197   : > { %v1616_v58 = vpack.c.bf16 %v1588_v54, %v1587_v52  ;;  %v1487_v59 = vadd.f32 %v1437_v49, %v870_v57  ;;  %2294 = vrot.lane.b32.xlu0 %v870_v57, %s3226_s17  ;;  %v3032_v60 = vpop.f32.mrb[89].mxu0 }
 0x198   : > { %v873_v62 = vpop.f32.mrb[90].mxu0 }
 0x199   : > { %v1537_v2 = vmax.f32 %v1487_v59, 0.0  ;;  %v1488_v3 = vadd.f32 %v1438_v55, %v873_v62  ;;  %2296 = vrot.lane.b32.xlu1 %v873_v62, %s3226_s17  ;;  %v3033_v4 = vpop.f32.mrb[91].mxu0  ;;  %3129 = vmatmul.mubr.msk.bf16.gmra.mrb[84].mxu1 %vm1621_vm4, %v1616_v58  ;;  %v2209_v62 = vpop.permute.xlu1 %2208 }
 0x19a   : > { %3132 = vmatprep.mubr.msk.bf16.mxu1 %vm3225_vm1, %v3224_v1 }
 0x19b   : > { %v1538_v5 = vmax.f32 %v1488_v3, 0.0  ;;  %v1589_v9 = vmul.f32 %v3706_v53, %v1537_v2 }
 0x19d   : > { %v1590_v10 = vmul.f32 %v3726_v11, %v1538_v5 }
 0x19e   : > { %v878_v15 = vpop.f32.mrb[92].mxu0 }
 0x19f   : > { %v1617_v17 = vpack.c.bf16 %v1590_v10, %v1589_v9  ;;  %v1489_v18 = vadd.f32 %v1439_v6, %v878_v15  ;;  %2298 = vrot.lane.b32.xlu0 %v878_v15, %s3226_s17  ;;  %v3036_v19 = vpop.f32.mrb[93].mxu0  ;;  %v2211_v10 = vpop.permute.xlu0 %2210 }
 0x1a0   : > { %v881_v21 = vpop.f32.mrb[94].mxu0  ;;  %v2213_v19 = vpop.permute.xlu1 %2212 }
 0x1a1   : > { %v1539_v23 = vmax.f32 %v1489_v18, 0.0  ;;  %v1490_v24 = vadd.f32 %v1440_v12, %v881_v21  ;;  %2300 = vrot.lane.b32.xlu1 %v881_v21, %s3226_s17  ;;  %v3037_v25 = vpop.f32.mrb[95].mxu0  ;;  %3133 = vmatmul.mubr.msk.bf16.gmra.mrb[88].mxu1 %vm1621_vm4, %v1617_v17 }
 0x1a2   : > { %3136 = vmatprep.mubr.msk.bf16.mxu1 %vm3225_vm1, %v3224_v1 }
 0x1a3   : > { %v1540_v27 = vmax.f32 %v1490_v24, 0.0  ;;  %v1591_v29 = vmul.f32 %v3706_v53, %v1539_v23 }
 0x1a5   : > { %v1592_v30 = vmul.f32 %v3726_v11, %v1540_v27 }
 0x1a6   : > { %v886_v32 = vpop.f32.mrb[96].mxu0 }
 0x1a7   : > { %v1618_v33 = vpack.c.bf16 %v1592_v30, %v1591_v29  ;;  %v1491_v34 = vadd.f32 %v1441_v28, %v886_v32  ;;  %2302 = vrot.lane.b32.xlu0 %v886_v32, %s3226_s17  ;;  %v3040_v35 = vpop.f32.mrb[97].mxu0 }
 0x1a8   : > { %v889_v36 = vpop.f32.mrb[98].mxu0 }
 0x1a9   : > { %v1541_v37 = vmax.f32 %v1491_v34, 0.0  ;;  %v1492_v38 = vadd.f32 %v1442_v31, %v889_v36  ;;  %2304 = vrot.lane.b32.xlu1 %v889_v36, %s3226_s17  ;;  %v3041_v39 = vpop.f32.mrb[99].mxu0  ;;  %3137 = vmatmul.mubr.msk.bf16.gmra.mrb[92].mxu1 %vm1621_vm4, %v1618_v33  ;;  %v2215_v31 = vpop.permute.xlu0 %2214 }
 0x1aa   : > { %3140 = vmatprep.mubr.msk.bf16.mxu1 %vm3225_vm1, %v3224_v1  ;;  %v3797_v1 = vld [vmem:[%s4075_s7] ss:$0 sm:$0xff] }
 0x1ab   : > { %v1542_v40 = vmax.f32 %v1492_v38, 0.0  ;;  %v1593_v41 = vmul.f32 %v3706_v53, %v1541_v37  ;;  %v2217_v37 = vpop.permute.xlu1 %2216 }
 0x1ad   : > { %v1594_v42 = vmul.f32 %v3726_v11, %v1542_v40 }
 0x1af   : > { %v1619_v43 = vpack.c.bf16 %v1594_v42, %v1593_v41 }
 0x1b1   : > { %3141 = vmatmul.mubr.msk.bf16.gmra.mrb[96].mxu1 %vm1621_vm4, %v1619_v43 }
 0x1c4   : > { %v1735_v45 = vpop.f32.mrb[0].mxu1 }
 0x1c5   : > { %v1942_v46 = vadd.f32 %v3789_v44, %v1735_v45  ;;  %v3046_v47 = vpop.f32.mrb[1].mxu1 }
 0x1c6   : > { %v1738_v53 = vpop.f32.mrb[2].mxu1 }
 0x1c7   : > { %v1994_v48 = vmax.f32 %v1942_v46, 0.0  ;;  %v1943_v11 = vadd.f32 %v3792_v14, %v1738_v53  ;;  %v3047_v49 = vpop.f32.mrb[3].mxu1 }
 0x1c9   : > { %v2050_v52 = vmul.f32 %v3797_v1, %v1994_v48  ;;  %v1995_v54 = vmax.f32 %v1943_v11, 0.0  ;;  %v2219_v11 = vpop.permute.xlu0 %2218 }
 0x1cb   : > { %v2106_v55 = vadd.f32 %v3803_v51, %v2050_v52  ;;  %v2051_v56 = vmul.f32 %v3797_v1, %v1995_v54 }
 0x1cc   : > { %v1743_v57 = vpop.f32.mrb[4].mxu1 }
 0x1cd   : > { %v2356_v58 = vadd.f32 %v2207_v50, %v2106_v55  ;;  %v2107_v59 = vadd.f32 %v3803_v51, %v2051_v56  ;;  %v1944_v60 = vadd.f32 %v3789_v44, %v1743_v57  ;;  %v3050_v61 = vpop.f32.mrb[5].mxu1  ;;  %v2221_v56 = vpop.permute.xlu1 %2220 }
 0x1ce   : > { %v1746_v63 = vpop.f32.mrb[6].mxu1 }
 0x1cf   : > { %v2406_v0 = vmax.f32 %v2356_v58, 0.0  ;;  %v2357_v2 = vadd.f32 %v2209_v62, %v2107_v59  ;;  %v1996_v3 = vmax.f32 %v1944_v60, 0.0  ;;  %v1945_v4 = vadd.f32 %v3792_v14, %v1746_v63  ;;  %v3051_v16 = vpop.f32.mrb[7].mxu1 }
 0x1d0   : > { %v2223_v16 = vpop.permute.xlu0 %2222 }
 0x1d1   : > { %2456 = vst.msk [vmem:[%s3814_s21] sm:$0xff] %vm1621_vm4, %v2406_v0  ;;  %v2407_v5 = vmax.f32 %v2357_v2, 0.0  ;;  %v2052_v6 = vmul.f32 %v3797_v1, %v1996_v3  ;;  %v1997_v7 = vmax.f32 %v1945_v4, 0.0 }
 0x1d3   : > { %2457 = vst.msk [vmem:[%s3814_s21 + $0x8] sm:$0xff] %vm1621_vm4, %v2407_v5  ;;  %v2108_v8 = vadd.f32 %v3803_v51, %v2052_v6  ;;  %v2053_v9 = vmul.f32 %v3797_v1, %v1997_v7 }
 0x1d4   : > { %v1751_v12 = vpop.f32.mrb[8].mxu1 }
 0x1d5   : > { %v2358_v13 = vadd.f32 %v2211_v10, %v2108_v8  ;;  %v2109_v15 = vadd.f32 %v3803_v51, %v2053_v9  ;;  %v1946_v17 = vadd.f32 %v3789_v44, %v1751_v12  ;;  %v3054_v18 = vpop.f32.mrb[9].mxu1  ;;  %v2225_v10 = vpop.permute.xlu1 %2224 }
 0x1d6   : > { %v1754_v20 = vpop.f32.mrb[10].mxu1 }
 0x1d7   : > { %v2408_v21 = vmax.f32 %v2358_v13, 0.0  ;;  %v2359_v22 = vadd.f32 %v2213_v19, %v2109_v15  ;;  %v1998_v23 = vmax.f32 %v1946_v17, 0.0  ;;  %v1947_v24 = vadd.f32 %v3792_v14, %v1754_v20  ;;  %v3055_v25 = vpop.f32.mrb[11].mxu1 }
 0x1d8   : > { %v2227_v25 = vpop.permute.xlu0 %2226 }
 0x1d9   : > { %2458 = vst.msk [vmem:[%s3814_s21 + $0x10] sm:$0xff] %vm1621_vm4, %v2408_v21  ;;  %v2409_v26 = vmax.f32 %v2359_v22, 0.0  ;;  %v2054_v27 = vmul.f32 %v3797_v1, %v1998_v23  ;;  %v1999_v28 = vmax.f32 %v1947_v24, 0.0 }
 0x1db   : > { %2459 = vst.msk [vmem:[%s3814_s21 + $0x18] sm:$0xff] %vm1621_vm4, %v2409_v26  ;;  %v2110_v29 = vadd.f32 %v3803_v51, %v2054_v27  ;;  %v2055_v30 = vmul.f32 %v3797_v1, %v1999_v28 }
 0x1dc   : > { %v1759_v32 = vpop.f32.mrb[12].mxu1 }
 0x1dd   : > { %v2360_v33 = vadd.f32 %v2215_v31, %v2110_v29  ;;  %v2111_v34 = vadd.f32 %v3803_v51, %v2055_v30  ;;  %v1948_v35 = vadd.f32 %v3789_v44, %v1759_v32  ;;  %v3058_v36 = vpop.f32.mrb[13].mxu1  ;;  %v2229_v31 = vpop.permute.xlu1 %2228 }
 0x1de   : > { %v1762_v38 = vpop.f32.mrb[14].mxu1 }
 0x1df   : > { %v2410_v39 = vmax.f32 %v2360_v33, 0.0  ;;  %v2361_v40 = vadd.f32 %v2217_v37, %v2111_v34  ;;  %v2000_v41 = vmax.f32 %v1948_v35, 0.0  ;;  %v1949_v42 = vadd.f32 %v3792_v14, %v1762_v38  ;;  %v3059_v43 = vpop.f32.mrb[15].mxu1 }
 0x1e0   : > { %v2231_v43 = vpop.permute.xlu0 %2230 }
 0x1e1   : > { %2460 = vst.msk [vmem:[%s3814_s21 + $0x20] sm:$0xff] %vm1621_vm4, %v2410_v39  ;;  %v2411_v45 = vmax.f32 %v2361_v40, 0.0  ;;  %v2056_v46 = vmul.f32 %v3797_v1, %v2000_v41  ;;  %v2001_v47 = vmax.f32 %v1949_v42, 0.0 }
 0x1e3   : > { %2461 = vst.msk [vmem:[%s3814_s21 + $0x28] sm:$0xff] %vm1621_vm4, %v2411_v45  ;;  %v2112_v53 = vadd.f32 %v3803_v51, %v2056_v46  ;;  %v2057_v48 = vmul.f32 %v3797_v1, %v2001_v47 }
 0x1e4   : > { %v1767_v49 = vpop.f32.mrb[16].mxu1 }
 0x1e5   : > { %v2362_v50 = vadd.f32 %v2219_v11, %v2112_v53  ;;  %v2113_v52 = vadd.f32 %v3803_v51, %v2057_v48  ;;  %v1950_v54 = vadd.f32 %v3789_v44, %v1767_v49  ;;  %v3062_v55 = vpop.f32.mrb[17].mxu1  ;;  %v2233_v11 = vpop.permute.xlu1 %2232 }
 0x1e6   : > { %v1770_v57 = vpop.f32.mrb[18].mxu1 }
 0x1e7   : > { %v2412_v58 = vmax.f32 %v2362_v50, 0.0  ;;  %v2363_v59 = vadd.f32 %v2221_v56, %v2113_v52  ;;  %v2002_v60 = vmax.f32 %v1950_v54, 0.0  ;;  %v1951_v61 = vadd.f32 %v3792_v14, %v1770_v57  ;;  %v3063_v62 = vpop.f32.mrb[19].mxu1 }
 0x1e8   : > { %v2235_v62 = vpop.permute.xlu0 %2234 }
 0x1e9   : > { %2462 = vst.msk [vmem:[%s3814_s21 + $0x30] sm:$0xff] %vm1621_vm4, %v2412_v58  ;;  %v2413_v63 = vmax.f32 %v2363_v59, 0.0  ;;  %v2058_v0 = vmul.f32 %v3797_v1, %v2002_v60  ;;  %v2003_v2 = vmax.f32 %v1951_v61, 0.0 }
 0x1eb   : > { %2463 = vst.msk [vmem:[%s3814_s21 + $0x38] sm:$0xff] %vm1621_vm4, %v2413_v63  ;;  %v2114_v3 = vadd.f32 %v3803_v51, %v2058_v0  ;;  %v2059_v4 = vmul.f32 %v3797_v1, %v2003_v2 }
 0x1ec   : > { %v1775_v5 = vpop.f32.mrb[20].mxu1 }
 0x1ed   : > { %v2364_v6 = vadd.f32 %v2223_v16, %v2114_v3  ;;  %v2115_v7 = vadd.f32 %v3803_v51, %v2059_v4  ;;  %v1952_v8 = vadd.f32 %v3789_v44, %v1775_v5  ;;  %v3066_v9 = vpop.f32.mrb[21].mxu1  ;;  %v2237_v16 = vpop.permute.xlu1 %2236 }
 0x1ee   : > { %v1778_v12 = vpop.f32.mrb[22].mxu1 }
 0x1ef   : > { %v2414_v13 = vmax.f32 %v2364_v6, 0.0  ;;  %v2365_v15 = vadd.f32 %v2225_v10, %v2115_v7  ;;  %v2004_v17 = vmax.f32 %v1952_v8, 0.0  ;;  %v1953_v18 = vadd.f32 %v3792_v14, %v1778_v12  ;;  %v3067_v19 = vpop.f32.mrb[23].mxu1 }
 0x1f0   : > { %v2239_v19 = vpop.permute.xlu0 %2238 }
 0x1f1   : > { %2464 = vst.msk [vmem:[%s3814_s21 + $0x40] sm:$0xff] %vm1621_vm4, %v2414_v13  ;;  %v2415_v20 = vmax.f32 %v2365_v15, 0.0  ;;  %v2060_v21 = vmul.f32 %v3797_v1, %v2004_v17  ;;  %v2005_v22 = vmax.f32 %v1953_v18, 0.0 }
 0x1f3   : > { %2465 = vst.msk [vmem:[%s3814_s21 + $0x48] sm:$0xff] %vm1621_vm4, %v2415_v20  ;;  %v2116_v23 = vadd.f32 %v3803_v51, %v2060_v21  ;;  %v2061_v24 = vmul.f32 %v3797_v1, %v2005_v22 }
 0x1f4   : > { %v1783_v26 = vpop.f32.mrb[24].mxu1 }
 0x1f5   : > { %v2366_v27 = vadd.f32 %v2227_v25, %v2116_v23  ;;  %v2117_v28 = vadd.f32 %v3803_v51, %v2061_v24  ;;  %v1954_v29 = vadd.f32 %v3789_v44, %v1783_v26  ;;  %v3070_v30 = vpop.f32.mrb[25].mxu1  ;;  %v2241_v25 = vpop.permute.xlu1 %2240 }
 0x1f6   : > { %v1786_v32 = vpop.f32.mrb[26].mxu1 }
 0x1f7   : > { %v2416_v33 = vmax.f32 %v2366_v27, 0.0  ;;  %v2367_v34 = vadd.f32 %v2229_v31, %v2117_v28  ;;  %v2006_v35 = vmax.f32 %v1954_v29, 0.0  ;;  %v1955_v36 = vadd.f32 %v3792_v14, %v1786_v32  ;;  %v3071_v37 = vpop.f32.mrb[27].mxu1 }
 0x1f8   : > { %v2243_v37 = vpop.permute.xlu0 %2242 }
 0x1f9   : > { %2466 = vst.msk [vmem:[%s3814_s21 + $0x50] sm:$0xff] %vm1621_vm4, %v2416_v33  ;;  %v2417_v38 = vmax.f32 %v2367_v34, 0.0  ;;  %v2062_v39 = vmul.f32 %v3797_v1, %v2006_v35  ;;  %v2007_v40 = vmax.f32 %v1955_v36, 0.0 }
 0x1fb   : > { %2467 = vst.msk [vmem:[%s3814_s21 + $0x58] sm:$0xff] %vm1621_vm4, %v2417_v38  ;;  %v2118_v41 = vadd.f32 %v3803_v51, %v2062_v39  ;;  %v2063_v42 = vmul.f32 %v3797_v1, %v2007_v40 }
 0x1fc   : > { %v1791_v45 = vpop.f32.mrb[28].mxu1 }
 0x1fd   : > { %v2368_v46 = vadd.f32 %v2231_v43, %v2118_v41  ;;  %v2119_v47 = vadd.f32 %v3803_v51, %v2063_v42  ;;  %v1956_v53 = vadd.f32 %v3789_v44, %v1791_v45  ;;  %v3074_v48 = vpop.f32.mrb[29].mxu1  ;;  %v2245_v43 = vpop.permute.xlu1 %2244 }
 0x1fe   : > { %v1794_v49 = vpop.f32.mrb[30].mxu1 }
 0x1ff   : > { %v2418_v50 = vmax.f32 %v2368_v46, 0.0  ;;  %v2369_v52 = vadd.f32 %v2233_v11, %v2119_v47  ;;  %v2008_v54 = vmax.f32 %v1956_v53, 0.0  ;;  %v1957_v55 = vadd.f32 %v3792_v14, %v1794_v49  ;;  %v3075_v56 = vpop.f32.mrb[31].mxu1 }
 0x200   : > { %v2247_v56 = vpop.permute.xlu0 %2246 }
 0x201   : > { %2468 = vst.msk [vmem:[%s3814_s21 + $0x60] sm:$0xff] %vm1621_vm4, %v2418_v50  ;;  %v2419_v57 = vmax.f32 %v2369_v52, 0.0  ;;  %v2064_v58 = vmul.f32 %v3797_v1, %v2008_v54  ;;  %v2009_v59 = vmax.f32 %v1957_v55, 0.0 }
 0x203   : > { %2469 = vst.msk [vmem:[%s3814_s21 + $0x68] sm:$0xff] %vm1621_vm4, %v2419_v57  ;;  %v2120_v60 = vadd.f32 %v3803_v51, %v2064_v58  ;;  %v2065_v61 = vmul.f32 %v3797_v1, %v2009_v59 }
 0x204   : > { %v1799_v63 = vpop.f32.mrb[32].mxu1 }
 0x205   : > { %v2370_v0 = vadd.f32 %v2235_v62, %v2120_v60  ;;  %v2121_v2 = vadd.f32 %v3803_v51, %v2065_v61  ;;  %v1958_v3 = vadd.f32 %v3789_v44, %v1799_v63  ;;  %v3078_v4 = vpop.f32.mrb[33].mxu1  ;;  %v2249_v62 = vpop.permute.xlu1 %2248 }
 0x206   : > { %v1802_v5 = vpop.f32.mrb[34].mxu1 }
 0x207   : > { %v2420_v6 = vmax.f32 %v2370_v0, 0.0  ;;  %v2371_v7 = vadd.f32 %v2237_v16, %v2121_v2  ;;  %v2010_v8 = vmax.f32 %v1958_v3, 0.0  ;;  %v1959_v9 = vadd.f32 %v3792_v14, %v1802_v5  ;;  %v3079_v10 = vpop.f32.mrb[35].mxu1 }
 0x208   : > { %v2251_v10 = vpop.permute.xlu0 %2250 }
 0x209   : > { %2470 = vst.msk [vmem:[%s3814_s21 + $0x70] sm:$0xff] %vm1621_vm4, %v2420_v6  ;;  %v2421_v12 = vmax.f32 %v2371_v7, 0.0  ;;  %v2066_v13 = vmul.f32 %v3797_v1, %v2010_v8  ;;  %v2011_v15 = vmax.f32 %v1959_v9, 0.0 }
 0x20b   : > { %2471 = vst.msk [vmem:[%s3814_s21 + $0x78] sm:$0xff] %vm1621_vm4, %v2421_v12  ;;  %v2122_v17 = vadd.f32 %v3803_v51, %v2066_v13  ;;  %v2067_v18 = vmul.f32 %v3797_v1, %v2011_v15 }
 0x20c   : > { %v1807_v20 = vpop.f32.mrb[36].mxu1 }
 0x20d   : > { %v2372_v21 = vadd.f32 %v2239_v19, %v2122_v17  ;;  %v2123_v22 = vadd.f32 %v3803_v51, %v2067_v18  ;;  %v1960_v23 = vadd.f32 %v3789_v44, %v1807_v20  ;;  %v3082_v24 = vpop.f32.mrb[37].mxu1  ;;  %v2253_v19 = vpop.permute.xlu1 %2252 }
 0x20e   : > { %v1810_v26 = vpop.f32.mrb[38].mxu1 }
 0x20f   : > { %v2422_v27 = vmax.f32 %v2372_v21, 0.0  ;;  %v2373_v28 = vadd.f32 %v2241_v25, %v2123_v22  ;;  %v2012_v29 = vmax.f32 %v1960_v23, 0.0  ;;  %v1961_v30 = vadd.f32 %v3792_v14, %v1810_v26  ;;  %v3083_v31 = vpop.f32.mrb[39].mxu1 }
 0x210   : > { %v2255_v31 = vpop.permute.xlu0 %2254 }
 0x211   : > { %2472 = vst.msk [vmem:[%s3814_s21 + $0x80] sm:$0xff] %vm1621_vm4, %v2422_v27  ;;  %v2423_v32 = vmax.f32 %v2373_v28, 0.0  ;;  %v2068_v33 = vmul.f32 %v3797_v1, %v2012_v29  ;;  %v2013_v34 = vmax.f32 %v1961_v30, 0.0 }
 0x213   : > { %2473 = vst.msk [vmem:[%s3814_s21 + $0x88] sm:$0xff] %vm1621_vm4, %v2423_v32  ;;  %v2124_v35 = vadd.f32 %v3803_v51, %v2068_v33  ;;  %v2069_v36 = vmul.f32 %v3797_v1, %v2013_v34 }
 0x214   : > { %v1815_v38 = vpop.f32.mrb[40].mxu1 }
 0x215   : > { %v2374_v39 = vadd.f32 %v2243_v37, %v2124_v35  ;;  %v2125_v40 = vadd.f32 %v3803_v51, %v2069_v36  ;;  %v1962_v41 = vadd.f32 %v3789_v44, %v1815_v38  ;;  %v3086_v42 = vpop.f32.mrb[41].mxu1  ;;  %v2257_v37 = vpop.permute.xlu1 %2256 }
 0x216   : > { %v1818_v45 = vpop.f32.mrb[42].mxu1 }
 0x217   : > { %v2424_v46 = vmax.f32 %v2374_v39, 0.0  ;;  %v2375_v47 = vadd.f32 %v2245_v43, %v2125_v40  ;;  %v2014_v53 = vmax.f32 %v1962_v41, 0.0  ;;  %v1963_v48 = vadd.f32 %v3792_v14, %v1818_v45  ;;  %v3087_v11 = vpop.f32.mrb[43].mxu1 }
 0x218   : > { %v2259_v11 = vpop.permute.xlu0 %2258 }
 0x219   : > { %2474 = vst.msk [vmem:[%s3814_s21 + $0x90] sm:$0xff] %vm1621_vm4, %v2424_v46  ;;  %v2425_v49 = vmax.f32 %v2375_v47, 0.0  ;;  %v2070_v50 = vmul.f32 %v3797_v1, %v2014_v53  ;;  %v2015_v52 = vmax.f32 %v1963_v48, 0.0 }
 0x21b   : > { %2475 = vst.msk [vmem:[%s3814_s21 + $0x98] sm:$0xff] %vm1621_vm4, %v2425_v49  ;;  %v2126_v54 = vadd.f32 %v3803_v51, %v2070_v50  ;;  %v2071_v55 = vmul.f32 %v3797_v1, %v2015_v52 }
 0x21c   : > { %v1823_v57 = vpop.f32.mrb[44].mxu1 }
 0x21d   : > { %v2376_v58 = vadd.f32 %v2247_v56, %v2126_v54  ;;  %v2127_v59 = vadd.f32 %v3803_v51, %v2071_v55  ;;  %v1964_v60 = vadd.f32 %v3789_v44, %v1823_v57  ;;  %v3090_v61 = vpop.f32.mrb[45].mxu1  ;;  %v2261_v56 = vpop.permute.xlu1 %2260 }
 0x21e   : > { %v1826_v63 = vpop.f32.mrb[46].mxu1 }
 0x21f   : > { %v2426_v0 = vmax.f32 %v2376_v58, 0.0  ;;  %v2377_v2 = vadd.f32 %v2249_v62, %v2127_v59  ;;  %v2016_v3 = vmax.f32 %v1964_v60, 0.0  ;;  %v1965_v4 = vadd.f32 %v3792_v14, %v1826_v63  ;;  %v3091_v16 = vpop.f32.mrb[47].mxu1 }
 0x220   : > { %v2263_v16 = vpop.permute.xlu0 %2262 }
 0x221   : > { %2476 = vst.msk [vmem:[%s3814_s21 + $0xa0] sm:$0xff] %vm1621_vm4, %v2426_v0  ;;  %v2427_v5 = vmax.f32 %v2377_v2, 0.0  ;;  %v2072_v6 = vmul.f32 %v3797_v1, %v2016_v3  ;;  %v2017_v7 = vmax.f32 %v1965_v4, 0.0 }
 0x223   : > { %2477 = vst.msk [vmem:[%s3814_s21 + $0xa8] sm:$0xff] %vm1621_vm4, %v2427_v5  ;;  %v2128_v8 = vadd.f32 %v3803_v51, %v2072_v6  ;;  %v2073_v9 = vmul.f32 %v3797_v1, %v2017_v7 }
 0x224   : > { %v1831_v12 = vpop.f32.mrb[48].mxu1 }
 0x225   : > { %v2378_v13 = vadd.f32 %v2251_v10, %v2128_v8  ;;  %v2129_v15 = vadd.f32 %v3803_v51, %v2073_v9  ;;  %v1966_v17 = vadd.f32 %v3789_v44, %v1831_v12  ;;  %v3094_v18 = vpop.f32.mrb[49].mxu1  ;;  %v2265_v10 = vpop.permute.xlu1 %2264 }
 0x226   : > { %v1834_v20 = vpop.f32.mrb[50].mxu1 }
 0x227   : > { %v2428_v21 = vmax.f32 %v2378_v13, 0.0  ;;  %v2379_v22 = vadd.f32 %v2253_v19, %v2129_v15  ;;  %v2018_v23 = vmax.f32 %v1966_v17, 0.0  ;;  %v1967_v24 = vadd.f32 %v3792_v14, %v1834_v20  ;;  %v3095_v25 = vpop.f32.mrb[51].mxu1 }
 0x228   : > { %v2267_v25 = vpop.permute.xlu0 %2266 }
 0x229   : > { %2478 = vst.msk [vmem:[%s3814_s21 + $0xb0] sm:$0xff] %vm1621_vm4, %v2428_v21  ;;  %v2429_v26 = vmax.f32 %v2379_v22, 0.0  ;;  %v2074_v27 = vmul.f32 %v3797_v1, %v2018_v23  ;;  %v2019_v28 = vmax.f32 %v1967_v24, 0.0 }
 0x22b   : > { %2479 = vst.msk [vmem:[%s3814_s21 + $0xb8] sm:$0xff] %vm1621_vm4, %v2429_v26  ;;  %v2130_v29 = vadd.f32 %v3803_v51, %v2074_v27  ;;  %v2075_v30 = vmul.f32 %v3797_v1, %v2019_v28 }
 0x22c   : > { %v1839_v32 = vpop.f32.mrb[52].mxu1 }
 0x22d   : > { %v2380_v33 = vadd.f32 %v2255_v31, %v2130_v29  ;;  %v2131_v34 = vadd.f32 %v3803_v51, %v2075_v30  ;;  %v1968_v35 = vadd.f32 %v3789_v44, %v1839_v32  ;;  %v3098_v36 = vpop.f32.mrb[53].mxu1  ;;  %v2269_v31 = vpop.permute.xlu1 %2268 }
 0x22e   : > { %v1842_v38 = vpop.f32.mrb[54].mxu1 }
 0x22f   : > { %v2430_v39 = vmax.f32 %v2380_v33, 0.0  ;;  %v2381_v40 = vadd.f32 %v2257_v37, %v2131_v34  ;;  %v2020_v41 = vmax.f32 %v1968_v35, 0.0  ;;  %v1969_v42 = vadd.f32 %v3792_v14, %v1842_v38  ;;  %v3099_v43 = vpop.f32.mrb[55].mxu1 }
 0x230   : > { %v2271_v43 = vpop.permute.xlu0 %2270 }
 0x231   : > { %2480 = vst.msk [vmem:[%s3814_s21 + $0xc0] sm:$0xff] %vm1621_vm4, %v2430_v39  ;;  %v2431_v45 = vmax.f32 %v2381_v40, 0.0  ;;  %v2076_v46 = vmul.f32 %v3797_v1, %v2020_v41  ;;  %v2021_v47 = vmax.f32 %v1969_v42, 0.0 }
 0x233   : > { %2481 = vst.msk [vmem:[%s3814_s21 + $0xc8] sm:$0xff] %vm1621_vm4, %v2431_v45  ;;  %v2132_v53 = vadd.f32 %v3803_v51, %v2076_v46  ;;  %v2077_v48 = vmul.f32 %v3797_v1, %v2021_v47 }
 0x234   : > { %v1847_v49 = vpop.f32.mrb[56].mxu1 }
 0x235   : > { %v2382_v50 = vadd.f32 %v2259_v11, %v2132_v53  ;;  %v2133_v52 = vadd.f32 %v3803_v51, %v2077_v48  ;;  %v1970_v54 = vadd.f32 %v3789_v44, %v1847_v49  ;;  %v3102_v55 = vpop.f32.mrb[57].mxu1  ;;  %v2273_v11 = vpop.permute.xlu1 %2272 }
 0x236   : > { %v1850_v57 = vpop.f32.mrb[58].mxu1 }
 0x237   : > { %v2432_v58 = vmax.f32 %v2382_v50, 0.0  ;;  %v2383_v59 = vadd.f32 %v2261_v56, %v2133_v52  ;;  %v2022_v60 = vmax.f32 %v1970_v54, 0.0  ;;  %v1971_v61 = vadd.f32 %v3792_v14, %v1850_v57  ;;  %v3103_v62 = vpop.f32.mrb[59].mxu1 }
 0x238   : > { %v2275_v62 = vpop.permute.xlu0 %2274 }
 0x239   : > { %2482 = vst.msk [vmem:[%s3814_s21 + $0xd0] sm:$0xff] %vm1621_vm4, %v2432_v58  ;;  %v2433_v63 = vmax.f32 %v2383_v59, 0.0  ;;  %v2078_v0 = vmul.f32 %v3797_v1, %v2022_v60  ;;  %v2023_v2 = vmax.f32 %v1971_v61, 0.0 }
 0x23b   : > { %2483 = vst.msk [vmem:[%s3814_s21 + $0xd8] sm:$0xff] %vm1621_vm4, %v2433_v63  ;;  %v2134_v3 = vadd.f32 %v3803_v51, %v2078_v0  ;;  %v2079_v4 = vmul.f32 %v3797_v1, %v2023_v2 }
 0x23c   : > { %v1855_v5 = vpop.f32.mrb[60].mxu1 }
 0x23d   : > { %v2384_v6 = vadd.f32 %v2263_v16, %v2134_v3  ;;  %v2135_v7 = vadd.f32 %v3803_v51, %v2079_v4  ;;  %v1972_v8 = vadd.f32 %v3789_v44, %v1855_v5  ;;  %v3106_v9 = vpop.f32.mrb[61].mxu1  ;;  %v2277_v16 = vpop.permute.xlu1 %2276 }
 0x23e   : > { %v1858_v12 = vpop.f32.mrb[62].mxu1 }
 0x23f   : > { %v2434_v13 = vmax.f32 %v2384_v6, 0.0  ;;  %v2385_v15 = vadd.f32 %v2265_v10, %v2135_v7  ;;  %v2024_v17 = vmax.f32 %v1972_v8, 0.0  ;;  %v1973_v18 = vadd.f32 %v3792_v14, %v1858_v12  ;;  %v3107_v19 = vpop.f32.mrb[63].mxu1 }
 0x240   : > { %v2279_v19 = vpop.permute.xlu0 %2278 }
 0x241   : > { %2484 = vst.msk [vmem:[%s3814_s21 + $0xe0] sm:$0xff] %vm1621_vm4, %v2434_v13  ;;  %v2435_v20 = vmax.f32 %v2385_v15, 0.0  ;;  %v2080_v21 = vmul.f32 %v3797_v1, %v2024_v17  ;;  %v2025_v22 = vmax.f32 %v1973_v18, 0.0 }
 0x243   : > { %2485 = vst.msk [vmem:[%s3814_s21 + $0xe8] sm:$0xff] %vm1621_vm4, %v2435_v20  ;;  %v2136_v23 = vadd.f32 %v3803_v51, %v2080_v21  ;;  %v2081_v24 = vmul.f32 %v3797_v1, %v2025_v22 }
 0x244   : > { %v1863_v26 = vpop.f32.mrb[64].mxu1 }
 0x245   : > { %v2386_v27 = vadd.f32 %v2267_v25, %v2136_v23  ;;  %v2137_v28 = vadd.f32 %v3803_v51, %v2081_v24  ;;  %v1974_v29 = vadd.f32 %v3789_v44, %v1863_v26  ;;  %v3110_v30 = vpop.f32.mrb[65].mxu1  ;;  %v2281_v25 = vpop.permute.xlu1 %2280 }
 0x246   : > { %v1866_v32 = vpop.f32.mrb[66].mxu1 }
 0x247   : > { %v2436_v33 = vmax.f32 %v2386_v27, 0.0  ;;  %v2387_v34 = vadd.f32 %v2269_v31, %v2137_v28  ;;  %v2026_v35 = vmax.f32 %v1974_v29, 0.0  ;;  %v1975_v36 = vadd.f32 %v3792_v14, %v1866_v32  ;;  %v3111_v37 = vpop.f32.mrb[67].mxu1 }
 0x248   : > { %v2283_v37 = vpop.permute.xlu0 %2282 }
 0x249   : > { %2486 = vst.msk [vmem:[%s3814_s21 + $0xf0] sm:$0xff] %vm1621_vm4, %v2436_v33  ;;  %v2437_v38 = vmax.f32 %v2387_v34, 0.0  ;;  %v2082_v39 = vmul.f32 %v3797_v1, %v2026_v35  ;;  %v2027_v40 = vmax.f32 %v1975_v36, 0.0 }
 0x24b   : > { %2487 = vst.msk [vmem:[%s3814_s21 + $0xf8] sm:$0xff] %vm1621_vm4, %v2437_v38  ;;  %v2138_v41 = vadd.f32 %v3803_v51, %v2082_v39  ;;  %v2083_v42 = vmul.f32 %v3797_v1, %v2027_v40 }
 0x24c   : > { %v1871_v45 = vpop.f32.mrb[68].mxu1 }
 0x24d   : > { %v2388_v46 = vadd.f32 %v2271_v43, %v2138_v41  ;;  %v2139_v47 = vadd.f32 %v3803_v51, %v2083_v42  ;;  %v1976_v53 = vadd.f32 %v3789_v44, %v1871_v45  ;;  %v3114_v48 = vpop.f32.mrb[69].mxu1  ;;  %v2285_v43 = vpop.permute.xlu1 %2284 }
 0x24e   : > { %v1874_v49 = vpop.f32.mrb[70].mxu1 }
 0x24f   : > { %v2438_v50 = vmax.f32 %v2388_v46, 0.0  ;;  %v2389_v52 = vadd.f32 %v2273_v11, %v2139_v47  ;;  %v2028_v54 = vmax.f32 %v1976_v53, 0.0  ;;  %v1977_v55 = vadd.f32 %v3792_v14, %v1874_v49  ;;  %v3115_v56 = vpop.f32.mrb[71].mxu1 }
 0x250   : > { %v2287_v56 = vpop.permute.xlu0 %2286 }
 0x251   : > { %2488 = vst.msk [vmem:[%s3814_s21 + $0x100] sm:$0xff] %vm1621_vm4, %v2438_v50  ;;  %v2439_v57 = vmax.f32 %v2389_v52, 0.0  ;;  %v2084_v58 = vmul.f32 %v3797_v1, %v2028_v54  ;;  %v2029_v59 = vmax.f32 %v1977_v55, 0.0 }
 0x253   : > { %2489 = vst.msk [vmem:[%s3814_s21 + $0x108] sm:$0xff] %vm1621_vm4, %v2439_v57  ;;  %v2140_v60 = vadd.f32 %v3803_v51, %v2084_v58  ;;  %v2085_v61 = vmul.f32 %v3797_v1, %v2029_v59 }
 0x254   : > { %v1879_v63 = vpop.f32.mrb[72].mxu1 }
 0x255   : > { %v2390_v0 = vadd.f32 %v2275_v62, %v2140_v60  ;;  %v2141_v2 = vadd.f32 %v3803_v51, %v2085_v61  ;;  %v1978_v3 = vadd.f32 %v3789_v44, %v1879_v63  ;;  %v3118_v4 = vpop.f32.mrb[73].mxu1  ;;  %v2289_v62 = vpop.permute.xlu1 %2288 }
 0x256   : > { %v1882_v5 = vpop.f32.mrb[74].mxu1 }
 0x257   : > { %v2440_v6 = vmax.f32 %v2390_v0, 0.0  ;;  %v2391_v7 = vadd.f32 %v2277_v16, %v2141_v2  ;;  %v2030_v8 = vmax.f32 %v1978_v3, 0.0  ;;  %v1979_v9 = vadd.f32 %v3792_v14, %v1882_v5  ;;  %v3119_v10 = vpop.f32.mrb[75].mxu1 }
 0x258   : > { %v2291_v10 = vpop.permute.xlu0 %2290 }
 0x259   : > { %2490 = vst.msk [vmem:[%s3814_s21 + $0x110] sm:$0xff] %vm1621_vm4, %v2440_v6  ;;  %v2441_v12 = vmax.f32 %v2391_v7, 0.0  ;;  %v2086_v13 = vmul.f32 %v3797_v1, %v2030_v8  ;;  %v2031_v15 = vmax.f32 %v1979_v9, 0.0 }
 0x25b   : > { %2491 = vst.msk [vmem:[%s3814_s21 + $0x118] sm:$0xff] %vm1621_vm4, %v2441_v12  ;;  %v2142_v17 = vadd.f32 %v3803_v51, %v2086_v13  ;;  %v2087_v18 = vmul.f32 %v3797_v1, %v2031_v15 }
 0x25c   : > { %v1887_v20 = vpop.f32.mrb[76].mxu1 }
 0x25d   : > { %v2392_v21 = vadd.f32 %v2279_v19, %v2142_v17  ;;  %v2143_v22 = vadd.f32 %v3803_v51, %v2087_v18  ;;  %v1980_v23 = vadd.f32 %v3789_v44, %v1887_v20  ;;  %v3122_v24 = vpop.f32.mrb[77].mxu1  ;;  %v2293_v19 = vpop.permute.xlu1 %2292 }
 0x25e   : > { %v1890_v26 = vpop.f32.mrb[78].mxu1 }
 0x25f   : > { %v2442_v27 = vmax.f32 %v2392_v21, 0.0  ;;  %v2393_v28 = vadd.f32 %v2281_v25, %v2143_v22  ;;  %v2032_v29 = vmax.f32 %v1980_v23, 0.0  ;;  %v1981_v30 = vadd.f32 %v3792_v14, %v1890_v26  ;;  %v3123_v31 = vpop.f32.mrb[79].mxu1 }
 0x260   : > { %v2295_v31 = vpop.permute.xlu0 %2294 }
 0x261   : > { %2492 = vst.msk [vmem:[%s3814_s21 + $0x120] sm:$0xff] %vm1621_vm4, %v2442_v27  ;;  %v2443_v32 = vmax.f32 %v2393_v28, 0.0  ;;  %v2088_v33 = vmul.f32 %v3797_v1, %v2032_v29  ;;  %v2033_v34 = vmax.f32 %v1981_v30, 0.0 }
 0x263   : > { %2493 = vst.msk [vmem:[%s3814_s21 + $0x128] sm:$0xff] %vm1621_vm4, %v2443_v32  ;;  %v2144_v35 = vadd.f32 %v3803_v51, %v2088_v33  ;;  %v2089_v36 = vmul.f32 %v3797_v1, %v2033_v34 }
 0x264   : > { %v1895_v38 = vpop.f32.mrb[80].mxu1 }
 0x265   : > { %v2394_v39 = vadd.f32 %v2283_v37, %v2144_v35  ;;  %v2145_v40 = vadd.f32 %v3803_v51, %v2089_v36  ;;  %v1982_v41 = vadd.f32 %v3789_v44, %v1895_v38  ;;  %v3126_v42 = vpop.f32.mrb[81].mxu1  ;;  %v2297_v37 = vpop.permute.xlu1 %2296 }
 0x266   : > { %v1898_v45 = vpop.f32.mrb[82].mxu1 }
 0x267   : > { %v2444_v46 = vmax.f32 %v2394_v39, 0.0  ;;  %v2395_v47 = vadd.f32 %v2285_v43, %v2145_v40  ;;  %v2034_v53 = vmax.f32 %v1982_v41, 0.0  ;;  %v1983_v48 = vadd.f32 %v3792_v14, %v1898_v45  ;;  %v3127_v11 = vpop.f32.mrb[83].mxu1 }
 0x268   : > { %v2299_v11 = vpop.permute.xlu0 %2298 }
 0x269   : > { %2494 = vst.msk [vmem:[%s3814_s21 + $0x130] sm:$0xff] %vm1621_vm4, %v2444_v46  ;;  %v2445_v49 = vmax.f32 %v2395_v47, 0.0  ;;  %v2090_v50 = vmul.f32 %v3797_v1, %v2034_v53  ;;  %v2035_v52 = vmax.f32 %v1983_v48, 0.0 }
 0x26b   : > { %2495 = vst.msk [vmem:[%s3814_s21 + $0x138] sm:$0xff] %vm1621_vm4, %v2445_v49  ;;  %v2146_v54 = vadd.f32 %v3803_v51, %v2090_v50  ;;  %v2091_v55 = vmul.f32 %v3797_v1, %v2035_v52 }
 0x26c   : > { %v1903_v57 = vpop.f32.mrb[84].mxu1 }
 0x26d   : > { %v2396_v58 = vadd.f32 %v2287_v56, %v2146_v54  ;;  %v2147_v59 = vadd.f32 %v3803_v51, %v2091_v55  ;;  %v1984_v60 = vadd.f32 %v3789_v44, %v1903_v57  ;;  %v3130_v61 = vpop.f32.mrb[85].mxu1  ;;  %v2301_v56 = vpop.permute.xlu1 %2300 }
 0x26e   : > { %v1906_v63 = vpop.f32.mrb[86].mxu1 }
 0x26f   : > { %v2446_v0 = vmax.f32 %v2396_v58, 0.0  ;;  %v2397_v2 = vadd.f32 %v2289_v62, %v2147_v59  ;;  %v2036_v3 = vmax.f32 %v1984_v60, 0.0  ;;  %v1985_v4 = vadd.f32 %v3792_v14, %v1906_v63  ;;  %v3131_v16 = vpop.f32.mrb[87].mxu1 }
 0x271   : > { %2496 = vst.msk [vmem:[%s3814_s21 + $0x140] sm:$0xff] %vm1621_vm4, %v2446_v0  ;;  %v2447_v5 = vmax.f32 %v2397_v2, 0.0  ;;  %v2092_v6 = vmul.f32 %v3797_v1, %v2036_v3  ;;  %v2037_v7 = vmax.f32 %v1985_v4, 0.0  ;;  %v2303_v4 = vpop.permute.xlu0 %2302 }
 0x273   : > { %2497 = vst.msk [vmem:[%s3814_s21 + $0x148] sm:$0xff] %vm1621_vm4, %v2447_v5  ;;  %v2148_v8 = vadd.f32 %v3803_v51, %v2092_v6  ;;  %v2093_v9 = vmul.f32 %v3797_v1, %v2037_v7  ;;  %v2305_v6 = vpop.permute.xlu1 %2304 }
 0x274   : > { %v1911_v12 = vpop.f32.mrb[88].mxu1 }
 0x275   : > { %v2398_v13 = vadd.f32 %v2291_v10, %v2148_v8  ;;  %v2149_v15 = vadd.f32 %v3803_v51, %v2093_v9  ;;  %v1986_v17 = vadd.f32 %v3789_v44, %v1911_v12  ;;  %v3134_v18 = vpop.f32.mrb[89].mxu1 }
 0x276   : > { %v1914_v20 = vpop.f32.mrb[90].mxu1 }
 0x277   : > { %v2448_v21 = vmax.f32 %v2398_v13, 0.0  ;;  %v2399_v22 = vadd.f32 %v2293_v19, %v2149_v15  ;;  %v2038_v23 = vmax.f32 %v1986_v17, 0.0  ;;  %v1987_v24 = vadd.f32 %v3792_v14, %v1914_v20  ;;  %v3135_v25 = vpop.f32.mrb[91].mxu1 }
 0x279   : > { %2498 = vst.msk [vmem:[%s3814_s21 + $0x150] sm:$0xff] %vm1621_vm4, %v2448_v21  ;;  %v2449_v26 = vmax.f32 %v2399_v22, 0.0  ;;  %v2094_v27 = vmul.f32 %v3797_v1, %v2038_v23  ;;  %v2039_v28 = vmax.f32 %v1987_v24, 0.0 }
 0x27b   : > { %2499 = vst.msk [vmem:[%s3814_s21 + $0x158] sm:$0xff] %vm1621_vm4, %v2449_v26  ;;  %v2150_v29 = vadd.f32 %v3803_v51, %v2094_v27  ;;  %v2095_v30 = vmul.f32 %v3797_v1, %v2039_v28 }
 0x27c   : > { %v1919_v32 = vpop.f32.mrb[92].mxu1 }
 0x27d   : > { %v2400_v33 = vadd.f32 %v2295_v31, %v2150_v29  ;;  %v2151_v34 = vadd.f32 %v3803_v51, %v2095_v30  ;;  %v1988_v35 = vadd.f32 %v3789_v44, %v1919_v32  ;;  %v3138_v36 = vpop.f32.mrb[93].mxu1 }
 0x27e   : > { %v1922_v38 = vpop.f32.mrb[94].mxu1 }
 0x27f   : > { %v2450_v39 = vmax.f32 %v2400_v33, 0.0  ;;  %v2401_v40 = vadd.f32 %v2297_v37, %v2151_v34  ;;  %v2040_v41 = vmax.f32 %v1988_v35, 0.0  ;;  %v1989_v42 = vadd.f32 %v3792_v14, %v1922_v38  ;;  %v3139_v43 = vpop.f32.mrb[95].mxu1 }
 0x281   : > { %2500 = vst.msk [vmem:[%s3814_s21 + $0x160] sm:$0xff] %vm1621_vm4, %v2450_v39  ;;  %v2451_v45 = vmax.f32 %v2401_v40, 0.0  ;;  %v2096_v46 = vmul.f32 %v3797_v1, %v2040_v41  ;;  %v2041_v47 = vmax.f32 %v1989_v42, 0.0 }
 0x283   : > { %2501 = vst.msk [vmem:[%s3814_s21 + $0x168] sm:$0xff] %vm1621_vm4, %v2451_v45  ;;  %v2152_v53 = vadd.f32 %v3803_v51, %v2096_v46  ;;  %v2097_v48 = vmul.f32 %v3797_v1, %v2041_v47 }
 0x284   : > { %v1927_v49 = vpop.f32.mrb[96].mxu1 }
 0x285   : > { %v2402_v50 = vadd.f32 %v2299_v11, %v2152_v53  ;;  %v2153_v52 = vadd.f32 %v3803_v51, %v2097_v48  ;;  %v1990_v54 = vadd.f32 %v3789_v44, %v1927_v49  ;;  %v3142_v55 = vpop.f32.mrb[97].mxu1 }
 0x286   : > { %v1930_v57 = vpop.f32.mrb[98].mxu1 }
 0x287   : > { %v2452_v58 = vmax.f32 %v2402_v50, 0.0  ;;  %v2403_v59 = vadd.f32 %v2301_v56, %v2153_v52  ;;  %v2042_v60 = vmax.f32 %v1990_v54, 0.0  ;;  %v1991_v61 = vadd.f32 %v3792_v14, %v1930_v57  ;;  %v3143_v62 = vpop.f32.mrb[99].mxu1 }
 0x289   : > { %2502 = vst.msk [vmem:[%s3814_s21 + $0x170] sm:$0xff] %vm1621_vm4, %v2452_v58  ;;  %v2453_v63 = vmax.f32 %v2403_v59, 0.0  ;;  %v2098_v0 = vmul.f32 %v3797_v1, %v2042_v60  ;;  %v2043_v2 = vmax.f32 %v1991_v61, 0.0 }
 0x28b   : > { %2503 = vst.msk [vmem:[%s3814_s21 + $0x178] sm:$0xff] %vm1621_vm4, %v2453_v63  ;;  %v2154_v44 = vadd.f32 %v3803_v51, %v2098_v0  ;;  %v2099_v3 = vmul.f32 %v3797_v1, %v2043_v2 }
 0x28d   : > { %v2404_v16 = vadd.f32 %v2303_v4, %v2154_v44  ;;  %v2155_v5 = vadd.f32 %v3803_v51, %v2099_v3 }
 0x28f   : > { %v2454_v14 = vmax.f32 %v2404_v16, 0.0  ;;  %v2405_v7 = vadd.f32 %v2305_v6, %v2155_v5 }
 0x291   : > { %2504 = vst.msk [vmem:[%s3814_s21 + $0x180] sm:$0xff] %vm1621_vm4, %v2454_v14  ;;  %v2455_v8 = vmax.f32 %v2405_v7, 0.0 }
 0x293   : > { %2505 = vst.msk [vmem:[%s3814_s21 + $0x188] sm:$0xff] %vm1621_vm4, %v2455_v8 }
 0x294 PF: > { %s18_s29 = sadd.s32 1, %s3222_s29   ;;  %s4077_s27 = smov %s3218_s28 }
 0x295   : > { %p15_p5 = scmp.ge.s32.totalorder %s18_s29, 4   ;;  %s4078_s28 = smov %s4080_s30 }
 0x297   :  { %17 = sbr.rel (!%p15_p5) target bundleno = 2 (0x2), region = 88 }

</bundles_post_ra>
